<compile_context>
chip_gen: v7x
topology: tpu7x:2x2x1
jax: 0.10.0
libtpu: 0.0.40
codegen_flags: <defaults>
</compile_context>

<pallas_src>
import functools

import jax
import jax.numpy as jnp
from jax.experimental import pallas as pl
from jax.experimental.pallas import tpu as pltpu


_GATE_ORDER = (0, 1, 3, 2)  # PyTorch gate order (i, f, g, o) -> kernel layout (i, f, o, g)


def _lstm_fc_kernel(x_ref, wih_ref, whh_ref, b_ref, wfc_ref, bfc_ref,
                    y_ref, xg_scr, *, unroll):
    """One grid step = one batch tile over the full sequence."""
    T, Bb, n_in_p = x_ref.shape
    H_p = whh_ref.shape[0]

    # ---- Phase 1 (no time dependency): input projection for all timesteps. ----
    # (T*Bb, n_in_p) @ (n_in_p, 4*H_p) in one MXU matmul, bf16 in / f32 accumulate.
    x2d = x_ref[...].reshape(T * Bb, n_in_p)
    xg_scr[...] = (
        jnp.dot(x2d, wih_ref[...], preferred_element_type=jnp.float32) + b_ref[...]
    )

    # ---- Phase 2: serial recurrence — only h @ W_hh + elementwise per step. ----
    def step(t, carry):
        h, c = carry
        row = pl.multiple_of(t * Bb, Bb)
        gates = xg_scr[pl.ds(row, Bb), :] + jnp.dot(
            h.astype(jnp.bfloat16), whh_ref[...],
            preferred_element_type=jnp.float32)
        # Gate layout (repacked wrapper-side): [ i | f | o | g ], each H_p lanes wide.
        sig = jax.nn.sigmoid(gates[:, : 3 * H_p])   # one EUP slab for i, f, o
        g_g = jnp.tanh(gates[:, 3 * H_p:])
        i_g = sig[:, 0 * H_p:1 * H_p]
        f_g = sig[:, 1 * H_p:2 * H_p]
        o_g = sig[:, 2 * H_p:3 * H_p]
        c_new = f_g * c + i_g * g_g
        h_new = o_g * jnp.tanh(c_new)
        return (h_new, c_new)

    h0 = jnp.zeros((Bb, H_p), jnp.float32)
    c0 = jnp.zeros((Bb, H_p), jnp.float32)
    h_T, _ = jax.lax.fori_loop(0, T, step, (h0, c0), unroll=unroll)

    # TODO(synk): for Bb<=16 latency-bound regimes, drive the recurrence matmul with
    # pltpu.matmul_push_rhs/_acc_lhs/_pop so W_hh stays resident in MXU weight regs.

    # ---- Final FC on the last timestep's hidden state (lane-dense output). ----
    y_ref[...] = (
        jnp.dot(h_T.astype(jnp.bfloat16), wfc_ref[...],
                preferred_element_type=jnp.float32) + bfc_ref[...]
    )


def _round_up(v, m):
    return ((v + m - 1) // m) * m


def _pack_gate_weight(w, H, H_p, d_in, d_in_p):
    """PyTorch (4H, d_in) gate-stacked weight -> (d_in_p, 4*H_p) right-multiply operand,
    gates reordered to (i, f, o, g) and each gate block zero-padded to H_p columns so
    gate slices stay 128-lane aligned."""
    w4 = w.reshape(4, H, d_in).astype(jnp.float32)
    w4 = jnp.stack([w4[g] for g in _GATE_ORDER])
    w4 = jnp.pad(w4, ((0, 0), (0, H_p - H), (0, d_in_p - d_in)))
    return jnp.transpose(w4, (2, 0, 1)).reshape(d_in_p, 4 * H_p)


def _pack_gate_bias(b, H, H_p):
    b4 = b.reshape(4, H).astype(jnp.float32)
    b4 = jnp.stack([b4[g] for g in _GATE_ORDER])
    b4 = jnp.pad(b4, ((0, 0), (0, H_p - H)))
    return b4.reshape(1, 4 * H_p)


@jax.jit
def net_forward(x, w_ih, w_hh, b_ih, b_hh, w_fc, b_fc):
    """x: (B, T, n_in) batch-first; params in PyTorch nn.LSTM / nn.Linear layout."""
    B, T, n_in = x.shape
    H = w_hh.shape[1]
    n_out = w_fc.shape[0]

    # Batch tile: as large as useful for MXU occupancy, capped at 128 so the f32 xg
    # scratch fits v7x's 64 MiB VMEM even at T=28, H=256.
    B_BLK = min(128, _round_up(B, 8))
    B_p = _round_up(B, B_BLK)
    n_in_p = _round_up(n_in, 128)
    H_p = _round_up(H, 128)
    n_out_p = _round_up(n_out, 128)

    # Wrapper-side layout plumbing: pad to hardware tiles, time-major, bf16 operands.
    # Zero padding is exact: padded input columns contribute 0; padded gate/batch rows
    # are sliced away at the end.
    x_p = jnp.pad(x.astype(jnp.float32),
                  ((0, B_p - B), (0, 0), (0, n_in_p - n_in)))
    x_tbf = jnp.transpose(x_p, (1, 0, 2)).astype(jnp.bfloat16)    # (T, B_p, n_in_p)

    wih_t = _pack_gate_weight(w_ih, H, H_p, n_in, n_in_p).astype(jnp.bfloat16)
    whh_t = _pack_gate_weight(w_hh, H, H_p, H, H_p).astype(jnp.bfloat16)
    b_g = _pack_gate_bias(b_ih + b_hh, H, H_p)                     # (1, 4*H_p) f32
    wfc_t = jnp.pad(w_fc.T.astype(jnp.float32),
                    ((0, H_p - H), (0, n_out_p - n_out))).astype(jnp.bfloat16)
    bfc_p = jnp.pad(b_fc.astype(jnp.float32),
                    ((0, n_out_p - n_out),))[None, :]              # (1, n_out_p)

    n_b_blocks = B_p // B_BLK

    # Bound the recurrence unroll by vreg pressure of one (B_BLK, 4*H_p) f32 gates tile.
    gates_vregs = max(1, (B_BLK * 4 * H_p * 4) // 4096)
    unroll = max(1, min(T, 48 // gates_vregs))

    # Explicit VMEM budget (raises v5e/v6e scoped defaults; stays <= v7x's 64 MiB).
    bytes_xg = T * B_BLK * 4 * H_p * 4                       # f32 scratch
    bytes_x = 2 * T * B_BLK * n_in_p * 2                     # double-buffered bf16 x
    bytes_w = ((n_in_p + H_p) * 4 * H_p + H_p * n_out_p) * 2 \
        + (4 * H_p + n_out_p) * 4                            # single-buffered constants
    bytes_out = 2 * B_BLK * n_out_p * 4
    vmem_limit_bytes = min(
        max(int(1.25 * (bytes_xg + bytes_x + bytes_w + bytes_out)) + (8 << 20),
            32 << 20),
        64 << 20)

    def _const_spec(shape):
        # Constant index_map -> single-buffer; don't waste VMEM double-buffering weights.
        return pl.BlockSpec(shape, lambda b: (0, 0), pipeline_mode=pl.Buffered(1))

    grid_spec = pltpu.PrefetchScalarGridSpec(
        num_scalar_prefetch=0,
        grid=(n_b_blocks,),                                          # batch tiles
        in_specs=[
            pl.BlockSpec((T, B_BLK, n_in_p), lambda b: (0, b, 0)),   # x (time-major bf16)
            _const_spec((n_in_p, 4 * H_p)),                          # W_ih^T (bf16)
            _const_spec((H_p, 4 * H_p)),                             # W_hh^T (bf16)
            _const_spec((1, 4 * H_p)),                               # b_ih + b_hh (f32)
            _const_spec((H_p, n_out_p)),                             # W_fc^T (bf16)
            _const_spec((1, n_out_p)),                               # b_fc (f32)
        ],
        out_specs=pl.BlockSpec((B_BLK, n_out_p), lambda b: (b, 0)),
        scratch_shapes=[
            pltpu.VMEM((T * B_BLK, 4 * H_p), jnp.float32),   # hoisted X@W_ih + b
        ],
    )

    y_p = pl.pallas_call(
        functools.partial(_lstm_fc_kernel, unroll=unroll),
        out_shape=jax.ShapeDtypeStruct((B_p, n_out_p), jnp.float32),
        grid_spec=grid_spec,
        compiler_params=pltpu.CompilerParams(
            # TODO(synk): on v7x switch the batch axis to pltpu.CORE_PARALLEL (or use
            # pl.core_map over a tensorcore mesh) so multi-block batches actually shard
            # across both TensorCores; "parallel" kept here for v5e/v6e portability.
            dimension_semantics=("parallel",),
            vmem_limit_bytes=vmem_limit_bytes,
        ),
    )(x_tbf, wih_t, whh_t, b_g, wfc_t, bfc_p)

    return y_p[:B, :n_out]


def _reference_forward(x, w_ih, w_hh, b_ih, b_hh, w_fc, b_fc):
    """Pure-JAX reference reproducing torch.nn.LSTM + Linear with the same precision
    policy as the kernel (bf16 matmul operands, f32 accumulation)."""
    B, T, _ = x.shape
    H = w_hh.shape[1]
    wih_t = w_ih.T.astype(jnp.bfloat16)
    whh_t = w_hh.T.astype(jnp.bfloat16)
    wfc_t = w_fc.T.astype(jnp.bfloat16)
    b = (b_ih + b_hh)[None, :].astype(jnp.float32)

    def step(carry, x_t):
        h, c = carry
        g = (jnp.dot(x_t.astype(jnp.bfloat16), wih_t,
                     preferred_element_type=jnp.float32)
             + jnp.dot(h.astype(jnp.bfloat16), whh_t,
                       preferred_element_type=jnp.float32)
             + b)
        i = jax.nn.sigmoid(g[:, 0 * H:1 * H])
        f = jax.nn.sigmoid(g[:, 1 * H:2 * H])
        gg = jnp.tanh(g[:, 2 * H:3 * H])
        o = jax.nn.sigmoid(g[:, 3 * H:4 * H])
        c_new = f * c + i * gg
        h_new = o * jnp.tanh(c_new)
        return (h_new, c_new), None

    h0 = jnp.zeros((B, H), jnp.float32)
    c0 = jnp.zeros((B, H), jnp.float32)
    (h_T, _), _ = jax.lax.scan(step, (h0, c0), jnp.transpose(x, (1, 0, 2)))
    return (jnp.dot(h_T.astype(jnp.bfloat16), wfc_t,
                    preferred_element_type=jnp.float32) + b_fc[None, :])


if __name__ == "__main__":
    # Small shapes consistent with the module: n_in = n_out = img_size, hidden = n_mid.
    img_size = 16     # module uses 28 (scaled down)
    n_in = img_size
    n_mid = 32        # module uses 256 (scaled down)
    n_out = img_size
    B, T = 2, 8

    key = jax.random.PRNGKey(0)
    ks = jax.random.split(key, 8)
    bound = 1.0 / (n_mid ** 0.5)

    # PyTorch-layout parameters (uniform init like torch defaults).
    w_ih = jax.random.uniform(ks[0], (4 * n_mid, n_in), jnp.float32, -bound, bound)
    w_hh = jax.random.uniform(ks[1], (4 * n_mid, n_mid), jnp.float32, -bound, bound)
    b_ih = jax.random.uniform(ks[2], (4 * n_mid,), jnp.float32, -bound, bound)
    b_hh = jax.random.uniform(ks[3], (4 * n_mid,), jnp.float32, -bound, bound)
    w_fc = jax.random.uniform(ks[4], (n_out, n_mid), jnp.float32, -bound, bound)
    b_fc = jax.random.uniform(ks[5], (n_out,), jnp.float32, -bound, bound)
    x = jax.random.normal(ks[6], (B, T, n_in), jnp.float32)

    y = net_forward(x, w_ih, w_hh, b_ih, b_hh, w_fc, b_fc)
    y = jax.block_until_ready(y)

    y_ref = _reference_forward(x, w_ih, w_hh, b_ih, b_hh, w_fc, b_fc)
    assert y.shape == (B, n_out)
    assert jnp.allclose(y, y_ref, atol=1e-3, rtol=1e-3), "mismatch vs reference"

    print("KERNEL_OK")
</pallas_src>

<mosaic_0001>
module attributes {stable_mosaic.version = 11 : i64} {
  func.func @_lstm_fc_kernel(%arg0: i32, %arg1: memref<8x8x128xbf16, #tpu.memory_space<vmem>>, %arg2: memref<128x512xbf16, #tpu.memory_space<vmem>>, %arg3: memref<128x512xbf16, #tpu.memory_space<vmem>>, %arg4: memref<1x512xf32, #tpu.memory_space<vmem>>, %arg5: memref<128x128xbf16, #tpu.memory_space<vmem>>, %arg6: memref<1x128xf32, #tpu.memory_space<vmem>>, %arg7: memref<8x128xf32, #tpu.memory_space<vmem>>, %arg8: memref<64x512xf32, #tpu.memory_space<vmem>>) attributes {dimension_semantics = [#tpu.dimension_semantics<parallel>], iteration_bounds = array<i64: 1>, scalar_prefetch = 0 : i64, scratch_operands = 1 : i64, tpu.core_type = #tpu.core_type<tc>, window_params = [{transform_indices = @transform_0, window_bounds = array<i64: 8, 8, 128>}, {pipeline_mode = #tpu.pipeline_mode<synchronous>, transform_indices = @transform_1, window_bounds = array<i64: 128, 512>}, {pipeline_mode = #tpu.pipeline_mode<synchronous>, transform_indices = @transform_2, window_bounds = array<i64: 128, 512>}, {pipeline_mode = #tpu.pipeline_mode<synchronous>, transform_indices = @transform_3, window_bounds = array<i64: 1, 512>}, {pipeline_mode = #tpu.pipeline_mode<synchronous>, transform_indices = @transform_4, window_bounds = array<i64: 128, 128>}, {pipeline_mode = #tpu.pipeline_mode<synchronous>, transform_indices = @transform_5, window_bounds = array<i64: 1, 128>}, {transform_indices = @transform_6, window_bounds = array<i64: 8, 128>}]} {
    %c0 = arith.constant 0 : index
    %c0_0 = arith.constant 0 : index
    %c0_1 = arith.constant 0 : index
    %0 = vector.load %arg1[%c0, %c0_0, %c0_1] : memref<8x8x128xbf16, #tpu.memory_space<vmem>>, vector<8x8x128xbf16>
    %1 = vector.shape_cast %0 : vector<8x8x128xbf16> to vector<64x128xbf16>
    %c0_2 = arith.constant 0 : index
    %c0_3 = arith.constant 0 : index
    %2 = vector.load %arg2[%c0_2, %c0_3] : memref<128x512xbf16, #tpu.memory_space<vmem>>, vector<128x512xbf16>
    %cst = arith.constant dense<0.000000e+00> : vector<64x512xf32>
    %3 = tpu.matmul %1, %2, %cst {dimension_numbers = #tpu.dot_dimension_numbers<[1], [0], [0], [1], [0, 0, 1, 1], [], []>} : vector<64x128xbf16>, vector<128x512xbf16>, vector<64x512xf32> -> vector<64x512xf32>
    %c0_4 = arith.constant 0 : index
    %c0_5 = arith.constant 0 : index
    %4 = vector.load %arg4[%c0_4, %c0_5] : memref<1x512xf32, #tpu.memory_space<vmem>>, vector<1x512xf32>
    %5 = vector.broadcast %4 : vector<1x512xf32> to vector<64x512xf32>
    %6 = arith.addf %3, %5 : vector<64x512xf32>
    %c0_6 = arith.constant 0 : index
    %c0_7 = arith.constant 0 : index
    %7 = vector.load %arg8[%c0_6, %c0_7] : memref<64x512xf32, #tpu.memory_space<vmem>>, vector<64x512xf32>
    tpu.vector_store %arg8[%c0_6, %c0_7], %6 {strides = array<i32>} : memref<64x512xf32, #tpu.memory_space<vmem>>, vector<64x512xf32>,
    %cst_8 = arith.constant 0.000000e+00 : f32
    %8 = vector.broadcast %cst_8 : f32 to vector<8x128xf32>
    %cst_9 = arith.constant 0.000000e+00 : f32
    %9 = vector.broadcast %cst_9 : f32 to vector<8x128xf32>
    %c0_i32 = arith.constant 0 : i32
    %c8_i32 = arith.constant 8 : i32
    %10 = arith.muli %c0_i32, %c8_i32 : i32
    %11 = tpu.assume_multiple %10, 8 : i32
    %12 = arith.index_cast %11 : i32 to index
    %c0_10 = arith.constant 0 : index
    %13 = vector.load %arg8[%12, %c0_10] : memref<64x512xf32, #tpu.memory_space<vmem>>, vector<8x512xf32>
    %14 = arith.truncf %8 : vector<8x128xf32> to vector<8x128xbf16>
    %c0_11 = arith.constant 0 : index
    %c0_12 = arith.constant 0 : index
    %15 = vector.load %arg3[%c0_11, %c0_12] : memref<128x512xbf16, #tpu.memory_space<vmem>>, vector<128x512xbf16>
    %cst_13 = arith.constant dense<0.000000e+00> : vector<8x512xf32>
    %16 = tpu.matmul %14, %15, %cst_13 {dimension_numbers = #tpu.dot_dimension_numbers<[1], [0], [0], [1], [0, 0, 1, 1], [], []>} : vector<8x128xbf16>, vector<128x512xbf16>, vector<8x512xf32> -> vector<8x512xf32>
    %17 = arith.addf %13, %16 : vector<8x512xf32>
    %18 = vector.extract_strided_slice %17 {offsets = [0, 0], sizes = [8, 384], strides = [1, 1]} : vector<8x512xf32> to vector<8x384xf32>
    %19 = arith.negf %18 : vector<8x384xf32>
    %20 = math.exp %19 : vector<8x384xf32>
    %cst_14 = arith.constant 1.000000e+00 : f32
    %21 = vector.broadcast %cst_14 : f32 to vector<8x384xf32>
    %22 = arith.addf %21, %20 : vector<8x384xf32>
    %23 = arith.divf %21, %22 : vector<8x384xf32>
    %24 = vector.extract_strided_slice %17 {offsets = [0, 384], sizes = [8, 128], strides = [1, 1]} : vector<8x512xf32> to vector<8x128xf32>
    %25 = math.tanh %24 : vector<8x128xf32>
    %26 = vector.extract_strided_slice %23 {offsets = [0, 0], sizes = [8, 128], strides = [1, 1]} : vector<8x384xf32> to vector<8x128xf32>
    %27 = vector.extract_strided_slice %23 {offsets = [0, 128], sizes = [8, 128], strides = [1, 1]} : vector<8x384xf32> to vector<8x128xf32>
    %28 = vector.extract_strided_slice %23 {offsets = [0, 256], sizes = [8, 128], strides = [1, 1]} : vector<8x384xf32> to vector<8x128xf32>
    %29 = arith.mulf %27, %9 : vector<8x128xf32>
    %30 = arith.mulf %26, %25 : vector<8x128xf32>
    %31 = arith.addf %29, %30 : vector<8x128xf32>
    %32 = math.tanh %31 : vector<8x128xf32>
    %33 = arith.mulf %28, %32 : vector<8x128xf32>
    %c1_i32 = arith.constant 1 : i32
    %c8_i32_15 = arith.constant 8 : i32
    %34 = arith.muli %c1_i32, %c8_i32_15 : i32
    %35 = tpu.assume_multiple %34, 8 : i32
    %36 = arith.index_cast %35 : i32 to index
    %c0_16 = arith.constant 0 : index
    %37 = vector.load %arg8[%36, %c0_16] : memref<64x512xf32, #tpu.memory_space<vmem>>, vector<8x512xf32>
    %38 = arith.truncf %33 : vector<8x128xf32> to vector<8x128xbf16>
    %c0_17 = arith.constant 0 : index
    %c0_18 = arith.constant 0 : index
    %39 = vector.load %arg3[%c0_17, %c0_18] : memref<128x512xbf16, #tpu.memory_space<vmem>>, vector<128x512xbf16>
    %cst_19 = arith.constant dense<0.000000e+00> : vector<8x512xf32>
    %40 = tpu.matmul %38, %39, %cst_19 {dimension_numbers = #tpu.dot_dimension_numbers<[1], [0], [0], [1], [0, 0, 1, 1], [], []>} : vector<8x128xbf16>, vector<128x512xbf16>, vector<8x512xf32> -> vector<8x512xf32>
    %41 = arith.addf %37, %40 : vector<8x512xf32>
    %42 = vector.extract_strided_slice %41 {offsets = [0, 0], sizes = [8, 384], strides = [1, 1]} : vector<8x512xf32> to vector<8x384xf32>
    %43 = arith.negf %42 : vector<8x384xf32>
    %44 = math.exp %43 : vector<8x384xf32>
    %cst_20 = arith.constant 1.000000e+00 : f32
    %45 = vector.broadcast %cst_20 : f32 to vector<8x384xf32>
    %46 = arith.addf %45, %44 : vector<8x384xf32>
    %47 = arith.divf %45, %46 : vector<8x384xf32>
    %48 = vector.extract_strided_slice %41 {offsets = [0, 384], sizes = [8, 128], strides = [1, 1]} : vector<8x512xf32> to vector<8x128xf32>
    %49 = math.tanh %48 : vector<8x128xf32>
    %50 = vector.extract_strided_slice %47 {offsets = [0, 0], sizes = [8, 128], strides = [1, 1]} : vector<8x384xf32> to vector<8x128xf32>
    %51 = vector.extract_strided_slice %47 {offsets = [0, 128], sizes = [8, 128], strides = [1, 1]} : vector<8x384xf32> to vector<8x128xf32>
    %52 = vector.extract_strided_slice %47 {offsets = [0, 256], sizes = [8, 128], strides = [1, 1]} : vector<8x384xf32> to vector<8x128xf32>
    %53 = arith.mulf %51, %31 : vector<8x128xf32>
    %54 = arith.mulf %50, %49 : vector<8x128xf32>
    %55 = arith.addf %53, %54 : vector<8x128xf32>
    %56 = math.tanh %55 : vector<8x128xf32>
    %57 = arith.mulf %52, %56 : vector<8x128xf32>
    %c2_i32 = arith.constant 2 : i32
    %c8_i32_21 = arith.constant 8 : i32
    %58 = arith.muli %c2_i32, %c8_i32_21 : i32
    %59 = tpu.assume_multiple %58, 8 : i32
    %60 = arith.index_cast %59 : i32 to index
    %c0_22 = arith.constant 0 : index
    %61 = vector.load %arg8[%60, %c0_22] : memref<64x512xf32, #tpu.memory_space<vmem>>, vector<8x512xf32>
    %62 = arith.truncf %57 : vector<8x128xf32> to vector<8x128xbf16>
    %c0_23 = arith.constant 0 : index
    %c0_24 = arith.constant 0 : index
    %63 = vector.load %arg3[%c0_23, %c0_24] : memref<128x512xbf16, #tpu.memory_space<vmem>>, vector<128x512xbf16>
    %cst_25 = arith.constant dense<0.000000e+00> : vector<8x512xf32>
    %64 = tpu.matmul %62, %63, %cst_25 {dimension_numbers = #tpu.dot_dimension_numbers<[1], [0], [0], [1], [0, 0, 1, 1], [], []>} : vector<8x128xbf16>, vector<128x512xbf16>, vector<8x512xf32> -> vector<8x512xf32>
    %65 = arith.addf %61, %64 : vector<8x512xf32>
    %66 = vector.extract_strided_slice %65 {offsets = [0, 0], sizes = [8, 384], strides = [1, 1]} : vector<8x512xf32> to vector<8x384xf32>
    %67 = arith.negf %66 : vector<8x384xf32>
    %68 = math.exp %67 : vector<8x384xf32>
    %cst_26 = arith.constant 1.000000e+00 : f32
    %69 = vector.broadcast %cst_26 : f32 to vector<8x384xf32>
    %70 = arith.addf %69, %68 : vector<8x384xf32>
    %71 = arith.divf %69, %70 : vector<8x384xf32>
    %72 = vector.extract_strided_slice %65 {offsets = [0, 384], sizes = [8, 128], strides = [1, 1]} : vector<8x512xf32> to vector<8x128xf32>
    %73 = math.tanh %72 : vector<8x128xf32>
    %74 = vector.extract_strided_slice %71 {offsets = [0, 0], sizes = [8, 128], strides = [1, 1]} : vector<8x384xf32> to vector<8x128xf32>
    %75 = vector.extract_strided_slice %71 {offsets = [0, 128], sizes = [8, 128], strides = [1, 1]} : vector<8x384xf32> to vector<8x128xf32>
    %76 = vector.extract_strided_slice %71 {offsets = [0, 256], sizes = [8, 128], strides = [1, 1]} : vector<8x384xf32> to vector<8x128xf32>
    %77 = arith.mulf %75, %55 : vector<8x128xf32>
    %78 = arith.mulf %74, %73 : vector<8x128xf32>
    %79 = arith.addf %77, %78 : vector<8x128xf32>
    %80 = math.tanh %79 : vector<8x128xf32>
    %81 = arith.mulf %76, %80 : vector<8x128xf32>
    %c3_i32 = arith.constant 3 : i32
    %c8_i32_27 = arith.constant 8 : i32
    %82 = arith.muli %c3_i32, %c8_i32_27 : i32
    %83 = tpu.assume_multiple %82, 8 : i32
    %84 = arith.index_cast %83 : i32 to index
    %c0_28 = arith.constant 0 : index
    %85 = vector.load %arg8[%84, %c0_28] : memref<64x512xf32, #tpu.memory_space<vmem>>, vector<8x512xf32>
    %86 = arith.truncf %81 : vector<8x128xf32> to vector<8x128xbf16>
    %c0_29 = arith.constant 0 : index
    %c0_30 = arith.constant 0 : index
    %87 = vector.load %arg3[%c0_29, %c0_30] : memref<128x512xbf16, #tpu.memory_space<vmem>>, vector<128x512xbf16>
    %cst_31 = arith.constant dense<0.000000e+00> : vector<8x512xf32>
    %88 = tpu.matmul %86, %87, %cst_31 {dimension_numbers = #tpu.dot_dimension_numbers<[1], [0], [0], [1], [0, 0, 1, 1], [], []>} : vector<8x128xbf16>, vector<128x512xbf16>, vector<8x512xf32> -> vector<8x512xf32>
    %89 = arith.addf %85, %88 : vector<8x512xf32>
    %90 = vector.extract_strided_slice %89 {offsets = [0, 0], sizes = [8, 384], strides = [1, 1]} : vector<8x512xf32> to vector<8x384xf32>
    %91 = arith.negf %90 : vector<8x384xf32>
    %92 = math.exp %91 : vector<8x384xf32>
    %cst_32 = arith.constant 1.000000e+00 : f32
    %93 = vector.broadcast %cst_32 : f32 to vector<8x384xf32>
    %94 = arith.addf %93, %92 : vector<8x384xf32>
    %95 = arith.divf %93, %94 : vector<8x384xf32>
    %96 = vector.extract_strided_slice %89 {offsets = [0, 384], sizes = [8, 128], strides = [1, 1]} : vector<8x512xf32> to vector<8x128xf32>
    %97 = math.tanh %96 : vector<8x128xf32>
    %98 = vector.extract_strided_slice %95 {offsets = [0, 0], sizes = [8, 128], strides = [1, 1]} : vector<8x384xf32> to vector<8x128xf32>
    %99 = vector.extract_strided_slice %95 {offsets = [0, 128], sizes = [8, 128], strides = [1, 1]} : vector<8x384xf32> to vector<8x128xf32>
    %100 = vector.extract_strided_slice %95 {offsets = [0, 256], sizes = [8, 128], strides = [1, 1]} : vector<8x384xf32> to vector<8x128xf32>
    %101 = arith.mulf %99, %79 : vector<8x128xf32>
    %102 = arith.mulf %98, %97 : vector<8x128xf32>
    %103 = arith.addf %101, %102 : vector<8x128xf32>
    %104 = math.tanh %103 : vector<8x128xf32>
    %105 = arith.mulf %100, %104 : vector<8x128xf32>
    %c4_i32 = arith.constant 4 : i32
    %c8_i32_33 = arith.constant 8 : i32
    %106 = arith.muli %c4_i32, %c8_i32_33 : i32
    %107 = tpu.assume_multiple %106, 8 : i32
    %108 = arith.index_cast %107 : i32 to index
    %c0_34 = arith.constant 0 : index
    %109 = vector.load %arg8[%108, %c0_34] : memref<64x512xf32, #tpu.memory_space<vmem>>, vector<8x512xf32>
    %110 = arith.truncf %105 : vector<8x128xf32> to vector<8x128xbf16>
    %c0_35 = arith.constant 0 : index
    %c0_36 = arith.constant 0 : index
    %111 = vector.load %arg3[%c0_35, %c0_36] : memref<128x512xbf16, #tpu.memory_space<vmem>>, vector<128x512xbf16>
    %cst_37 = arith.constant dense<0.000000e+00> : vector<8x512xf32>
    %112 = tpu.matmul %110, %111, %cst_37 {dimension_numbers = #tpu.dot_dimension_numbers<[1], [0], [0], [1], [0, 0, 1, 1], [], []>} : vector<8x128xbf16>, vector<128x512xbf16>, vector<8x512xf32> -> vector<8x512xf32>
    %113 = arith.addf %109, %112 : vector<8x512xf32>
    %114 = vector.extract_strided_slice %113 {offsets = [0, 0], sizes = [8, 384], strides = [1, 1]} : vector<8x512xf32> to vector<8x384xf32>
    %115 = arith.negf %114 : vector<8x384xf32>
    %116 = math.exp %115 : vector<8x384xf32>
    %cst_38 = arith.constant 1.000000e+00 : f32
    %117 = vector.broadcast %cst_38 : f32 to vector<8x384xf32>
    %118 = arith.addf %117, %116 : vector<8x384xf32>
    %119 = arith.divf %117, %118 : vector<8x384xf32>
    %120 = vector.extract_strided_slice %113 {offsets = [0, 384], sizes = [8, 128], strides = [1, 1]} : vector<8x512xf32> to vector<8x128xf32>
    %121 = math.tanh %120 : vector<8x128xf32>
    %122 = vector.extract_strided_slice %119 {offsets = [0, 0], sizes = [8, 128], strides = [1, 1]} : vector<8x384xf32> to vector<8x128xf32>
    %123 = vector.extract_strided_slice %119 {offsets = [0, 128], sizes = [8, 128], strides = [1, 1]} : vector<8x384xf32> to vector<8x128xf32>
    %124 = vector.extract_strided_slice %119 {offsets = [0, 256], sizes = [8, 128], strides = [1, 1]} : vector<8x384xf32> to vector<8x128xf32>
    %125 = arith.mulf %123, %103 : vector<8x128xf32>
    %126 = arith.mulf %122, %121 : vector<8x128xf32>
    %127 = arith.addf %125, %126 : vector<8x128xf32>
    %128 = math.tanh %127 : vector<8x128xf32>
    %129 = arith.mulf %124, %128 : vector<8x128xf32>
    %c5_i32 = arith.constant 5 : i32
    %c8_i32_39 = arith.constant 8 : i32
    %130 = arith.muli %c5_i32, %c8_i32_39 : i32
    %131 = tpu.assume_multiple %130, 8 : i32
    %132 = arith.index_cast %131 : i32 to index
    %c0_40 = arith.constant 0 : index
    %133 = vector.load %arg8[%132, %c0_40] : memref<64x512xf32, #tpu.memory_space<vmem>>, vector<8x512xf32>
    %134 = arith.truncf %129 : vector<8x128xf32> to vector<8x128xbf16>
    %c0_41 = arith.constant 0 : index
    %c0_42 = arith.constant 0 : index
    %135 = vector.load %arg3[%c0_41, %c0_42] : memref<128x512xbf16, #tpu.memory_space<vmem>>, vector<128x512xbf16>
    %cst_43 = arith.constant dense<0.000000e+00> : vector<8x512xf32>
    %136 = tpu.matmul %134, %135, %cst_43 {dimension_numbers = #tpu.dot_dimension_numbers<[1], [0], [0], [1], [0, 0, 1, 1], [], []>} : vector<8x128xbf16>, vector<128x512xbf16>, vector<8x512xf32> -> vector<8x512xf32>
    %137 = arith.addf %133, %136 : vector<8x512xf32>
    %138 = vector.extract_strided_slice %137 {offsets = [0, 0], sizes = [8, 384], strides = [1, 1]} : vector<8x512xf32> to vector<8x384xf32>
    %139 = arith.negf %138 : vector<8x384xf32>
    %140 = math.exp %139 : vector<8x384xf32>
    %cst_44 = arith.constant 1.000000e+00 : f32
    %141 = vector.broadcast %cst_44 : f32 to vector<8x384xf32>
    %142 = arith.addf %141, %140 : vector<8x384xf32>
    %143 = arith.divf %141, %142 : vector<8x384xf32>
    %144 = vector.extract_strided_slice %137 {offsets = [0, 384], sizes = [8, 128], strides = [1, 1]} : vector<8x512xf32> to vector<8x128xf32>
    %145 = math.tanh %144 : vector<8x128xf32>
    %146 = vector.extract_strided_slice %143 {offsets = [0, 0], sizes = [8, 128], strides = [1, 1]} : vector<8x384xf32> to vector<8x128xf32>
    %147 = vector.extract_strided_slice %143 {offsets = [0, 128], sizes = [8, 128], strides = [1, 1]} : vector<8x384xf32> to vector<8x128xf32>
    %148 = vector.extract_strided_slice %143 {offsets = [0, 256], sizes = [8, 128], strides = [1, 1]} : vector<8x384xf32> to vector<8x128xf32>
    %149 = arith.mulf %147, %127 : vector<8x128xf32>
    %150 = arith.mulf %146, %145 : vector<8x128xf32>
    %151 = arith.addf %149, %150 : vector<8x128xf32>
    %152 = math.tanh %151 : vector<8x128xf32>
    %153 = arith.mulf %148, %152 : vector<8x128xf32>
    %c6_i32 = arith.constant 6 : i32
    %c8_i32_45 = arith.constant 8 : i32
    %154 = arith.muli %c6_i32, %c8_i32_45 : i32
    %155 = tpu.assume_multiple %154, 8 : i32
    %156 = arith.index_cast %155 : i32 to index
    %c0_46 = arith.constant 0 : index
    %157 = vector.load %arg8[%156, %c0_46] : memref<64x512xf32, #tpu.memory_space<vmem>>, vector<8x512xf32>
    %158 = arith.truncf %153 : vector<8x128xf32> to vector<8x128xbf16>
    %c0_47 = arith.constant 0 : index
    %c0_48 = arith.constant 0 : index
    %159 = vector.load %arg3[%c0_47, %c0_48] : memref<128x512xbf16, #tpu.memory_space<vmem>>, vector<128x512xbf16>
    %cst_49 = arith.constant dense<0.000000e+00> : vector<8x512xf32>
    %160 = tpu.matmul %158, %159, %cst_49 {dimension_numbers = #tpu.dot_dimension_numbers<[1], [0], [0], [1], [0, 0, 1, 1], [], []>} : vector<8x128xbf16>, vector<128x512xbf16>, vector<8x512xf32> -> vector<8x512xf32>
    %161 = arith.addf %157, %160 : vector<8x512xf32>
    %162 = vector.extract_strided_slice %161 {offsets = [0, 0], sizes = [8, 384], strides = [1, 1]} : vector<8x512xf32> to vector<8x384xf32>
    %163 = arith.negf %162 : vector<8x384xf32>
    %164 = math.exp %163 : vector<8x384xf32>
    %cst_50 = arith.constant 1.000000e+00 : f32
    %165 = vector.broadcast %cst_50 : f32 to vector<8x384xf32>
    %166 = arith.addf %165, %164 : vector<8x384xf32>
    %167 = arith.divf %165, %166 : vector<8x384xf32>
    %168 = vector.extract_strided_slice %161 {offsets = [0, 384], sizes = [8, 128], strides = [1, 1]} : vector<8x512xf32> to vector<8x128xf32>
    %169 = math.tanh %168 : vector<8x128xf32>
    %170 = vector.extract_strided_slice %167 {offsets = [0, 0], sizes = [8, 128], strides = [1, 1]} : vector<8x384xf32> to vector<8x128xf32>
    %171 = vector.extract_strided_slice %167 {offsets = [0, 128], sizes = [8, 128], strides = [1, 1]} : vector<8x384xf32> to vector<8x128xf32>
    %172 = vector.extract_strided_slice %167 {offsets = [0, 256], sizes = [8, 128], strides = [1, 1]} : vector<8x384xf32> to vector<8x128xf32>
    %173 = arith.mulf %171, %151 : vector<8x128xf32>
    %174 = arith.mulf %170, %169 : vector<8x128xf32>
    %175 = arith.addf %173, %174 : vector<8x128xf32>
    %176 = math.tanh %175 : vector<8x128xf32>
    %177 = arith.mulf %172, %176 : vector<8x128xf32>
    %c7_i32 = arith.constant 7 : i32
    %c8_i32_51 = arith.constant 8 : i32
    %178 = arith.muli %c7_i32, %c8_i32_51 : i32
    %179 = tpu.assume_multiple %178, 8 : i32
    %180 = arith.index_cast %179 : i32 to index
    %c0_52 = arith.constant 0 : index
    %181 = vector.load %arg8[%180, %c0_52] : memref<64x512xf32, #tpu.memory_space<vmem>>, vector<8x512xf32>
    %182 = arith.truncf %177 : vector<8x128xf32> to vector<8x128xbf16>
    %c0_53 = arith.constant 0 : index
    %c0_54 = arith.constant 0 : index
    %183 = vector.load %arg3[%c0_53, %c0_54] : memref<128x512xbf16, #tpu.memory_space<vmem>>, vector<128x512xbf16>
    %cst_55 = arith.constant dense<0.000000e+00> : vector<8x512xf32>
    %184 = tpu.matmul %182, %183, %cst_55 {dimension_numbers = #tpu.dot_dimension_numbers<[1], [0], [0], [1], [0, 0, 1, 1], [], []>} : vector<8x128xbf16>, vector<128x512xbf16>, vector<8x512xf32> -> vector<8x512xf32>
    %185 = arith.addf %181, %184 : vector<8x512xf32>
    %186 = vector.extract_strided_slice %185 {offsets = [0, 0], sizes = [8, 384], strides = [1, 1]} : vector<8x512xf32> to vector<8x384xf32>
    %187 = arith.negf %186 : vector<8x384xf32>
    %188 = math.exp %187 : vector<8x384xf32>
    %cst_56 = arith.constant 1.000000e+00 : f32
    %189 = vector.broadcast %cst_56 : f32 to vector<8x384xf32>
    %190 = arith.addf %189, %188 : vector<8x384xf32>
    %191 = arith.divf %189, %190 : vector<8x384xf32>
    %192 = vector.extract_strided_slice %185 {offsets = [0, 384], sizes = [8, 128], strides = [1, 1]} : vector<8x512xf32> to vector<8x128xf32>
    %193 = math.tanh %192 : vector<8x128xf32>
    %194 = vector.extract_strided_slice %191 {offsets = [0, 0], sizes = [8, 128], strides = [1, 1]} : vector<8x384xf32> to vector<8x128xf32>
    %195 = vector.extract_strided_slice %191 {offsets = [0, 128], sizes = [8, 128], strides = [1, 1]} : vector<8x384xf32> to vector<8x128xf32>
    %196 = vector.extract_strided_slice %191 {offsets = [0, 256], sizes = [8, 128], strides = [1, 1]} : vector<8x384xf32> to vector<8x128xf32>
    %197 = arith.mulf %195, %175 : vector<8x128xf32>
    %198 = arith.mulf %194, %193 : vector<8x128xf32>
    %199 = arith.addf %197, %198 : vector<8x128xf32>
    %200 = math.tanh %199 : vector<8x128xf32>
    %201 = arith.mulf %196, %200 : vector<8x128xf32>
    %c8_i32_57 = arith.constant 8 : i32
    %202 = arith.truncf %201 : vector<8x128xf32> to vector<8x128xbf16>
    %c0_58 = arith.constant 0 : index
    %c0_59 = arith.constant 0 : index
    %203 = vector.load %arg5[%c0_58, %c0_59] : memref<128x128xbf16, #tpu.memory_space<vmem>>, vector<128x128xbf16>
    %cst_60 = arith.constant dense<0.000000e+00> : vector<8x128xf32>
    %204 = tpu.matmul %202, %203, %cst_60 {dimension_numbers = #tpu.dot_dimension_numbers<[1], [0], [0], [1], [0, 0, 1, 1], [], []>} : vector<8x128xbf16>, vector<128x128xbf16>, vector<8x128xf32> -> vector<8x128xf32>
    %c0_61 = arith.constant 0 : index
    %c0_62 = arith.constant 0 : index
    %205 = vector.load %arg6[%c0_61, %c0_62] : memref<1x128xf32, #tpu.memory_space<vmem>>, vector<1x128xf32>
    %206 = vector.broadcast %205 : vector<1x128xf32> to vector<8x128xf32>
    %207 = arith.addf %204, %206 : vector<8x128xf32>
    %c0_63 = arith.constant 0 : index
    %c0_64 = arith.constant 0 : index
    %208 = vector.load %arg7[%c0_63, %c0_64] : memref<8x128xf32, #tpu.memory_space<vmem>>, vector<8x128xf32>
    tpu.vector_store %arg7[%c0_63, %c0_64], %207 {strides = array<i32>} : memref<8x128xf32, #tpu.memory_space<vmem>>, vector<8x128xf32>,
    return
  }
  func.func @transform_0(%arg0: i32) -> (i32, i32, i32) {
    %c0_i32 = arith.constant 0 : i32
    %c0_i32_0 = arith.constant 0 : i32
    %c0_i32_1 = arith.constant 0 : i32
    return %c0_i32, %arg0, %c0_i32_0 : i32, i32, i32
  }
  func.func @transform_1(%arg0: i32) -> (i32, i32) {
    %c0_i32 = arith.constant 0 : i32
    %c0_i32_0 = arith.constant 0 : i32
    %c0_i32_1 = arith.constant 0 : i32
    return %c0_i32, %c0_i32_0 : i32, i32
  }
  func.func @transform_2(%arg0: i32) -> (i32, i32) {
    %c0_i32 = arith.constant 0 : i32
    %c0_i32_0 = arith.constant 0 : i32
    %c0_i32_1 = arith.constant 0 : i32
    return %c0_i32, %c0_i32_0 : i32, i32
  }
  func.func @transform_3(%arg0: i32) -> (i32, i32) {
    %c0_i32 = arith.constant 0 : i32
    %c0_i32_0 = arith.constant 0 : i32
    %c0_i32_1 = arith.constant 0 : i32
    return %c0_i32, %c0_i32_0 : i32, i32
  }
  func.func @transform_4(%arg0: i32) -> (i32, i32) {
    %c0_i32 = arith.constant 0 : i32
    %c0_i32_0 = arith.constant 0 : i32
    %c0_i32_1 = arith.constant 0 : i32
    return %c0_i32, %c0_i32_0 : i32, i32
  }
  func.func @transform_5(%arg0: i32) -> (i32, i32) {
    %c0_i32 = arith.constant 0 : i32
    %c0_i32_0 = arith.constant 0 : i32
    %c0_i32_1 = arith.constant 0 : i32
    return %c0_i32, %c0_i32_0 : i32, i32
  }
  func.func @transform_6(%arg0: i32) -> (i32, i32) {
    %c0_i32 = arith.constant 0 : i32
    %c0_i32_0 = arith.constant 0 : i32
    return %arg0, %c0_i32 : i32, i32
  }
}

</mosaic_0001>

<bundles_post_ra>
// kernel: net_forward.1
= control target key start
LH: loop header
LB: loop body
LE: loop exit
PB: predicated region body
PF: predicated region fallthrough
CT: control target
= control target key end

     0   :  { %v2998_v1 = vmov 0   ;;  %vm2110_vm0 = vmmov 0   ;;  %s2991_s1 = inlined_call_operand.vmem [shape: bf16[128,512], index: 1, kind: input, shape index: {}]   ;;  %s2992_s0 = inlined_call_operand.vmem [shape: bf16[8,8,128], index: 0, kind: input, shape index: {}]   ;;  %s2993_s2 = inlined_call_operand.vmem [shape: bf16[128,512], index: 2, kind: input, shape index: {}]   ;;  %s2994_s3 = inlined_call_operand.vmem [shape: f32[1,512], index: 3, kind: input, shape index: {}]   ;;  %s2995_s4 = inlined_call_operand.vmem [shape: bf16[128,128], index: 4, kind: input, shape index: {}]   ;;  %s2996_s5 = inlined_call_operand.vmem [shape: f32[1,128], index: 5, kind: input, shape index: {}]   ;;  %s2997_s6 = inlined_call_operand.vmem [shape: f32[8,128], index: 6, kind: output, shape index: {}]  }
   0x1   :  { %v1840_v0 = vld [vmem:[%s2991_s1 + $0x4] ss:$16 sps:$4 sm:$0xff]   ;;  %302 = vmatprep.mubr.bf16.mxu0 %v2998_v1  ;;  %375 = vmatprep.mubr.bf16.mxu1 %v2998_v1  ;;  %v1842_v2 = vld [vmem:[%s2991_s1 + $0xc] ss:$16 sps:$4 sm:$0xff]   ;;  %v1844_v3 = vld [vmem:[%s2991_s1] ss:$16 sps:$4 sm:$0xff]  }
   0x2   :  { %270 = vmatprep.subr.bf16.mxu0 %v1840_v0  ;;  %v1845_v4 = vld [vmem:[%s2991_s1 + $0x8] ss:$16 sps:$4 sm:$0xff]   ;;  %343 = vmatprep.subr.bf16.mxu1 %v1842_v2  ;;  %v1846_v5 = vld [vmem:[%s2991_s1 + $0x24] ss:$16 sps:$4 sm:$0xff]   ;;  %v1848_v6 = vld [vmem:[%s2991_s1 + $0x2c] ss:$16 sps:$4 sm:$0xff]  }
   0x3   :  { %271 = vmatpush1.bf16.msra.mxu0 %v1844_v3  ;;  %344 = vmatpush1.bf16.msra.mxu1 %v1845_v4  ;;  %v1850_v7 = vld [vmem:[%s2991_s1 + $0x20] ss:$16 sps:$4 sm:$0xff]   ;;  %v1851_v8 = vld [vmem:[%s2991_s1 + $0x28] ss:$16 sps:$4 sm:$0xff]   ;;  %v1852_v9 = vld [vmem:[%s2991_s1 + $0x44] ss:$16 sps:$4 sm:$0xff]  }
   0x4   :  { %272 = vmatprep.subr.bf16.mxu0 %v1846_v5  ;;  %345 = vmatprep.subr.bf16.mxu1 %v1848_v6  ;;  %v1854_v10 = vld [vmem:[%s2991_s1 + $0x4c] ss:$16 sps:$4 sm:$0xff]   ;;  %v1856_v11 = vld [vmem:[%s2991_s1 + $0x40] ss:$16 sps:$4 sm:$0xff]   ;;  %v1857_v12 = vld [vmem:[%s2991_s1 + $0x48] ss:$16 sps:$4 sm:$0xff]   ;;  %v66_v6 = vlaneseq }
   0x5   :  { %v1858_v13 = vld [vmem:[%s2991_s1 + $0x64] ss:$16 sps:$4 sm:$0xff]   ;;  %v1860_v14 = vld [vmem:[%s2991_s1 + $0x6c] ss:$16 sps:$4 sm:$0xff]   ;;  %v1862_v15 = vld [vmem:[%s2991_s1 + $0x60] ss:$16 sps:$4 sm:$0xff]  }
   0x6   :  { %v1863_v16 = vld [vmem:[%s2991_s1 + $0x68] ss:$16 sps:$4 sm:$0xff]   ;;  %v1864_v17 = vld [vmem:[%s2991_s1 + $0x84] ss:$16 sps:$4 sm:$0xff]   ;;  %v1866_v18 = vld [vmem:[%s2991_s1 + $0x8c] ss:$16 sps:$4 sm:$0xff]  }
   0x7   :  { %273 = vmatpush1.bf16.msra.mxu0 %v1850_v7  ;;  %346 = vmatpush1.bf16.msra.mxu1 %v1851_v8  ;;  %v1868_v19 = vld [vmem:[%s2991_s1 + $0x80] ss:$16 sps:$4 sm:$0xff]   ;;  %v1869_v20 = vld [vmem:[%s2991_s1 + $0x88] ss:$16 sps:$4 sm:$0xff]   ;;  %v1870_v21 = vld [vmem:[%s2991_s1 + $0xa4] ss:$16 sps:$4 sm:$0xff]  }
   0x8   :  { %274 = vmatprep.subr.bf16.mxu0 %v1852_v9  ;;  %347 = vmatprep.subr.bf16.mxu1 %v1854_v10  ;;  %v1872_v22 = vld [vmem:[%s2991_s1 + $0xac] ss:$16 sps:$4 sm:$0xff]   ;;  %v1874_v23 = vld [vmem:[%s2991_s1 + $0xa0] ss:$16 sps:$4 sm:$0xff]   ;;  %v1875_v24 = vld [vmem:[%s2991_s1 + $0xa8] ss:$16 sps:$4 sm:$0xff]  }
   0x9   :  { %v1876_v25 = vld [vmem:[%s2991_s1 + $0xc4] ss:$16 sps:$4 sm:$0xff]   ;;  %v1878_v26 = vld [vmem:[%s2991_s1 + $0xcc] ss:$16 sps:$4 sm:$0xff]   ;;  %v1880_v27 = vld [vmem:[%s2991_s1 + $0xc0] ss:$16 sps:$4 sm:$0xff]  }
   0xa   :  { %v1881_v28 = vld [vmem:[%s2991_s1 + $0xc8] ss:$16 sps:$4 sm:$0xff]   ;;  %v1882_v29 = vld [vmem:[%s2991_s1 + $0xe4] ss:$16 sps:$4 sm:$0xff]   ;;  %v1884_v30 = vld [vmem:[%s2991_s1 + $0xec] ss:$16 sps:$4 sm:$0xff]  }
   0xb   :  { %275 = vmatpush1.bf16.msra.mxu0 %v1856_v11  ;;  %348 = vmatpush1.bf16.msra.mxu1 %v1857_v12  ;;  %v1886_v31 = vld [vmem:[%s2991_s1 + $0xe0] ss:$16 sps:$4 sm:$0xff]   ;;  %v1887_v32 = vld [vmem:[%s2991_s1 + $0xe8] ss:$16 sps:$4 sm:$0xff]   ;;  %v2247_v33 = vld [vmem:[%s2993_s2 + $0x4] ss:$16 sps:$4 sm:$0xff]  }
   0xc   :  { %276 = vmatprep.subr.bf16.mxu0 %v1858_v13  ;;  %349 = vmatprep.subr.bf16.mxu1 %v1860_v14  ;;  %v2252_v34 = vld [vmem:[%s2993_s2 + $0xc] ss:$16 sps:$4 sm:$0xff]   ;;  %v1888_v35 = vld [vmem:[%s2992_s0] sm:$0xff]   ;;  %v2265_v37 = vld [vmem:[%s2993_s2 + $0x8] ss:$16 sps:$4 sm:$0xff]   ;;  %v67_v7 = vshrl.u32 %v66_v6, 7 }
   0xd   :  { %v2260_v36 = vld [vmem:[%s2993_s2] ss:$16 sps:$4 sm:$0xff]   ;;  %v2272_v38 = vld [vmem:[%s2993_s2 + $0x24] ss:$16 sps:$4 sm:$0xff]   ;;  %v2277_v39 = vld [vmem:[%s2993_s2 + $0x2c] ss:$16 sps:$4 sm:$0xff]  }
   0xe   :  { %v2282_v40 = vld [vmem:[%s2993_s2 + $0x20] ss:$16 sps:$4 sm:$0xff]   ;;  %v2289_v41 = vld [vmem:[%s2993_s2 + $0x28] ss:$16 sps:$4 sm:$0xff]   ;;  %v2296_v42 = vld [vmem:[%s2993_s2 + $0x44] ss:$16 sps:$4 sm:$0xff]  }
   0xf   :  { %277 = vmatpush1.bf16.msra.mxu0 %v1862_v15  ;;  %350 = vmatpush1.bf16.msra.mxu1 %v1863_v16  ;;  %v2301_v43 = vld [vmem:[%s2993_s2 + $0x4c] ss:$16 sps:$4 sm:$0xff]   ;;  %v2311_v45 = vld [vmem:[%s2993_s2 + $0x40] ss:$16 sps:$4 sm:$0xff]   ;;  %v2316_v46 = vld [vmem:[%s2993_s2 + $0x48] ss:$16 sps:$4 sm:$0xff]  }
  0x10   :  { %278 = vmatprep.subr.bf16.mxu0 %v1864_v17  ;;  %351 = vmatprep.subr.bf16.mxu1 %v1866_v18  ;;  %v1901_v44 = vld [vmem:[%s2992_s0 + $0x8] sm:$0xff]   ;;  %v2323_v47 = vld [vmem:[%s2993_s2 + $0x64] ss:$16 sps:$4 sm:$0xff]   ;;  %v2335_v49 = vld [vmem:[%s2993_s2 + $0x60] ss:$16 sps:$4 sm:$0xff]   ;;  %v76_v8 = vsub.s32 2, %v67_v7 }
  0x11   :  { %v2330_v48 = vld [vmem:[%s2993_s2 + $0x6c] ss:$16 sps:$4 sm:$0xff]   ;;  %v2340_v50 = vld [vmem:[%s2993_s2 + $0x68] ss:$16 sps:$4 sm:$0xff]   ;;  %v2347_v51 = vld [vmem:[%s2993_s2 + $0x84] ss:$16 sps:$4 sm:$0xff]  }
  0x12   :  { %v2354_v52 = vld [vmem:[%s2993_s2 + $0x8c] ss:$16 sps:$4 sm:$0xff]   ;;  %v1914_v53 = vld [vmem:[%s2992_s0 + $0x10] sm:$0xff]   ;;  %v2371_v55 = vld [vmem:[%s2993_s2 + $0x88] ss:$16 sps:$4 sm:$0xff]   ;;  %v80_v9 = vsub.s32 3, %v67_v7 }
  0x13   :  { %279 = vmatpush1.bf16.msra.mxu0 %v1868_v19  ;;  %352 = vmatpush1.bf16.msra.mxu1 %v1869_v20  ;;  %v2366_v54 = vld [vmem:[%s2993_s2 + $0x80] ss:$16 sps:$4 sm:$0xff]   ;;  %v2378_v56 = vld [vmem:[%s2993_s2 + $0xa4] ss:$16 sps:$4 sm:$0xff]   ;;  %v2383_v57 = vld [vmem:[%s2993_s2 + $0xac] ss:$16 sps:$4 sm:$0xff]  }
  0x14   :  { %280 = vmatprep.subr.bf16.mxu0 %v1870_v21  ;;  %353 = vmatprep.subr.bf16.mxu1 %v1872_v22  ;;  %v2390_v58 = vld [vmem:[%s2993_s2 + $0xa0] ss:$16 sps:$4 sm:$0xff]   ;;  %v2395_v59 = vld [vmem:[%s2993_s2 + $0xa8] ss:$16 sps:$4 sm:$0xff]   ;;  %v2402_v60 = vld [vmem:[%s2993_s2 + $0xc4] ss:$16 sps:$4 sm:$0xff]  }
  0x15   :  { %v2407_v61 = vld [vmem:[%s2993_s2 + $0xcc] ss:$16 sps:$4 sm:$0xff]   ;;  %v2419_v63 = vld [vmem:[%s2993_s2 + $0xc0] ss:$16 sps:$4 sm:$0xff]   ;;  %v2424_v0 = vld [vmem:[%s2993_s2 + $0xc8] ss:$16 sps:$4 sm:$0xff]  }
  0x16   :  { %v1927_v62 = vld [vmem:[%s2992_s0 + $0x18] sm:$0xff]   ;;  %v2431_v2 = vld [vmem:[%s2993_s2 + $0xe4] ss:$16 sps:$4 sm:$0xff]   ;;  %v2443_v4 = vld [vmem:[%s2993_s2 + $0xe0] ss:$16 sps:$4 sm:$0xff]   ;;  %v68_v10 = vsub.s32 0, %v67_v7 }
  0x17   :  { %281 = vmatpush1.bf16.msra.mxu0 %v1874_v23  ;;  %354 = vmatpush1.bf16.msra.mxu1 %v1875_v24  ;;  %v2436_v3 = vld [vmem:[%s2993_s2 + $0xec] ss:$16 sps:$4 sm:$0xff]   ;;  %v2448_v5 = vld [vmem:[%s2993_s2 + $0xe8] ss:$16 sps:$4 sm:$0xff]   ;;  %v64_v11 = vld [vmem:[%s2994_s3] sm:$0xf] }
  0x18   :  { %282 = vmatprep.subr.bf16.mxu0 %v1876_v25  ;;  %355 = vmatprep.subr.bf16.mxu1 %v1878_v26  ;;  %v72_v12 = vsub.s32 1, %v67_v7  ;;  %v2497_v13 = vrot.slane %v64_v11, %v76_v8  ;;  %v2503_v16 = vrot.slane %v64_v11, %v80_v9  ;;  %v69_v17 = vrot.slane %v64_v11, %v68_v10 }
  0x1a   :  { %v73_v20 = vrot.slane %v64_v11, %v72_v12 }
  0x1b   :  { %283 = vmatpush1.bf16.msra.mxu0 %v1880_v27  ;;  %356 = vmatpush1.bf16.msra.mxu1 %v1881_v28 }
  0x1c   :  { %284 = vmatprep.subr.bf16.mxu0 %v1882_v29  ;;  %357 = vmatprep.subr.bf16.mxu1 %v1884_v30 }
  0x1f   :  { %285 = vmatpush1.bf16.msra.mxu0 %v1886_v31  ;;  %358 = vmatpush1.bf16.msra.mxu1 %v1887_v32 }
  0x20   :  { %647 = vmatprep.subr.bf16.mxu0 %v2247_v33  ;;  %688 = vmatprep.subr.bf16.mxu1 %v2252_v34 }
  0x22   :  { %303 = vmatmul.mubr.bf16.vlgmr.msra.gmra.mrb[0].mxu0 %v1888_v35  ;;  %376 = vmatmul.mubr.bf16.vlgmr.msra.gmra.mrb[0].mxu1 %v1888_v35 }
  0x23   :  { %648 = vmatpush1.bf16.msra.mxu0 %v2260_v36  ;;  %689 = vmatpush1.bf16.msra.mxu1 %v2265_v37 }
  0x24   :  { %649 = vmatprep.subr.bf16.mxu0 %v2272_v38  ;;  %690 = vmatprep.subr.bf16.mxu1 %v2277_v39 }
  0x25   :  { %312 = vmatprep.mubr.bf16.mxu0 %v2998_v1  ;;  %385 = vmatprep.mubr.bf16.mxu1 %v2998_v1 }
  0x27   :  { %650 = vmatpush1.bf16.msra.mxu0 %v2282_v40  ;;  %691 = vmatpush1.bf16.msra.mxu1 %v2289_v41 }
  0x28   :  { %651 = vmatprep.subr.bf16.mxu0 %v2296_v42  ;;  %692 = vmatprep.subr.bf16.mxu1 %v2301_v43 }
  0x2a   :  { %313 = vmatmul.mubr.bf16.gmra.mrb[4].mxu0 %v1901_v44  ;;  %386 = vmatmul.mubr.bf16.gmra.mrb[4].mxu1 %v1901_v44 }
  0x2b   :  { %652 = vmatpush1.bf16.msra.mxu0 %v2311_v45  ;;  %693 = vmatpush1.bf16.msra.mxu1 %v2316_v46 }
  0x2c   :  { %653 = vmatprep.subr.bf16.mxu0 %v2323_v47  ;;  %694 = vmatprep.subr.bf16.mxu1 %v2330_v48 }
  0x2d   :  { %322 = vmatprep.mubr.bf16.mxu0 %v2998_v1  ;;  %395 = vmatprep.mubr.bf16.mxu1 %v2998_v1 }
  0x2f   :  { %654 = vmatpush1.bf16.msra.mxu0 %v2335_v49  ;;  %695 = vmatpush1.bf16.msra.mxu1 %v2340_v50 }
  0x30   :  { %655 = vmatprep.subr.bf16.mxu0 %v2347_v51  ;;  %696 = vmatprep.subr.bf16.mxu1 %v2354_v52 }
  0x32   :  { %323 = vmatmul.mubr.bf16.gmra.mrb[8].mxu0 %v1914_v53  ;;  %396 = vmatmul.mubr.bf16.gmra.mrb[8].mxu1 %v1914_v53 }
  0x33   :  { %656 = vmatpush1.bf16.msra.mxu0 %v2366_v54  ;;  %697 = vmatpush1.bf16.msra.mxu1 %v2371_v55 }
  0x34   :  { %657 = vmatprep.subr.bf16.mxu0 %v2378_v56  ;;  %698 = vmatprep.subr.bf16.mxu1 %v2383_v57 }
  0x35   :  { %332 = vmatprep.mubr.bf16.mxu0 %v2998_v1  ;;  %405 = vmatprep.mubr.bf16.mxu1 %v2998_v1 }
  0x37   :  { %658 = vmatpush1.bf16.msra.mxu0 %v2390_v58  ;;  %699 = vmatpush1.bf16.msra.mxu1 %v2395_v59 }
  0x38   :  { %659 = vmatprep.subr.bf16.mxu0 %v2402_v60  ;;  %700 = vmatprep.subr.bf16.mxu1 %v2407_v61 }
  0x3a   :  { %333 = vmatmul.mubr.bf16.gmra.mrb[12].mxu0 %v1927_v62  ;;  %406 = vmatmul.mubr.bf16.gmra.mrb[12].mxu1 %v1927_v62 }
  0x3b   :  { %660 = vmatpush1.bf16.msra.mxu0 %v2419_v63  ;;  %701 = vmatpush1.bf16.msra.mxu1 %v2424_v0 }
  0x3c   :  { %661 = vmatprep.subr.bf16.mxu0 %v2431_v2  ;;  %702 = vmatprep.subr.bf16.mxu1 %v2436_v3 }
  0x3d   :  { %679 = vmatprep.mubr.bf16.mxu0 %v2998_v1  ;;  %720 = vmatprep.mubr.bf16.mxu1 %v2998_v1 }
  0x3f   :  { %662 = vmatpush1.bf16.msra.mxu0 %v2443_v4  ;;  %703 = vmatpush1.bf16.msra.mxu1 %v2448_v5 }
  0x40   :  { %765 = vmatprep.subr.bf16.mxu0 %v2247_v33  ;;  %806 = vmatprep.subr.bf16.mxu1 %v2252_v34 }
  0x42   :  { %680 = vmatmul.mubr.bf16.vlgmr.msra.gmra.mrb[16].mxu0 %v2998_v1  ;;  %721 = vmatmul.mubr.bf16.vlgmr.msra.gmra.mrb[16].mxu1 %v2998_v1 }
  0x43   :  { %766 = vmatpush1.bf16.msra.mxu0 %v2260_v36  ;;  %807 = vmatpush1.bf16.msra.mxu1 %v2265_v37 }
  0x44   :  { %767 = vmatprep.subr.bf16.mxu0 %v2272_v38  ;;  %808 = vmatprep.subr.bf16.mxu1 %v2277_v39 }
  0x45   :  { %797 = vmatprep.mubr.bf16.mxu0 %v2998_v1  ;;  %838 = vmatprep.mubr.bf16.mxu1 %v2998_v1 }
  0x47   :  { %768 = vmatpush1.bf16.msra.mxu0 %v2282_v40  ;;  %809 = vmatpush1.bf16.msra.mxu1 %v2289_v41 }
  0x48   :  { %769 = vmatprep.subr.bf16.mxu0 %v2296_v42  ;;  %810 = vmatprep.subr.bf16.mxu1 %v2301_v43 }
  0x4b   :  { %770 = vmatpush1.bf16.msra.mxu0 %v2311_v45  ;;  %811 = vmatpush1.bf16.msra.mxu1 %v2316_v46 }
  0x4c   :  { %771 = vmatprep.subr.bf16.mxu0 %v2323_v47  ;;  %812 = vmatprep.subr.bf16.mxu1 %v2330_v48 }
  0x4f   :  { %772 = vmatpush1.bf16.msra.mxu0 %v2335_v49  ;;  %813 = vmatpush1.bf16.msra.mxu1 %v2340_v50 }
  0x50   :  { %773 = vmatprep.subr.bf16.mxu0 %v2347_v51  ;;  %814 = vmatprep.subr.bf16.mxu1 %v2354_v52 }
  0x53   :  { %774 = vmatpush1.bf16.msra.mxu0 %v2366_v54  ;;  %815 = vmatpush1.bf16.msra.mxu1 %v2371_v55 }
  0x54   :  { %775 = vmatprep.subr.bf16.mxu0 %v2378_v56  ;;  %816 = vmatprep.subr.bf16.mxu1 %v2383_v57 }
  0x57   :  { %776 = vmatpush1.bf16.msra.mxu0 %v2390_v58  ;;  %817 = vmatpush1.bf16.msra.mxu1 %v2395_v59 }
  0x58   :  { %777 = vmatprep.subr.bf16.mxu0 %v2402_v60  ;;  %818 = vmatprep.subr.bf16.mxu1 %v2407_v61 }
  0x5b   :  { %778 = vmatpush1.bf16.msra.mxu0 %v2419_v63  ;;  %819 = vmatpush1.bf16.msra.mxu1 %v2424_v0 }
  0x5c   :  { %779 = vmatprep.subr.bf16.mxu0 %v2431_v2  ;;  %820 = vmatprep.subr.bf16.mxu1 %v2436_v3 }
  0x5f   :  { %780 = vmatpush1.bf16.msra.mxu0 %v2443_v4  ;;  %821 = vmatpush1.bf16.msra.mxu1 %v2448_v5 }
  0x60   :  { %883 = vmatprep.subr.bf16.mxu0 %v2247_v33  ;;  %924 = vmatprep.subr.bf16.mxu1 %v2252_v34 }
  0xf5   :  { %v2499_v14 = vpop.f32.mrb[0].mxu0  ;;  %v2501_v15 = vpop.f32.mrb[0].mxu1 }
  0xf6   :  { %v306_v18 = vpop.f32.mrb[1].mxu0  ;;  %v379_v19 = vpop.f32.mrb[1].mxu1 }
  0xf7   :  { %v308_v21 = vpop.f32.mrb[2].mxu0  ;;  %v381_v22 = vpop.f32.mrb[2].mxu1 }
  0xf8   :  { %v2505_v23 = vadd.f32 %v308_v21, %v69_v17  ;;  %v310_v24 = vpop.f32.mrb[3].mxu0  ;;  %v2508_v25 = vadd.f32 %v381_v22, %v2497_v13  ;;  %v383_v26 = vpop.f32.mrb[3].mxu1 }
  0xf9   :  { %v2510_v27 = vadd.f32 %v310_v24, %v73_v20  ;;  %v2513_v28 = vadd.f32 %v383_v26, %v2503_v16 }
  0xfd   :  { %v314_v29 = vpop.f32.mrb[4].mxu0  ;;  %v387_v30 = vpop.f32.mrb[4].mxu1 }
  0xfe   :  { %v2515_v31 = vadd.f32 %v314_v29, %v69_v17  ;;  %v316_v32 = vpop.f32.mrb[5].mxu0  ;;  %v2518_v35 = vadd.f32 %v387_v30, %v2497_v13  ;;  %v389_v44 = vpop.f32.mrb[5].mxu1 }
  0xff   :  { %v2520_v53 = vadd.f32 %v316_v32, %v73_v20  ;;  %v318_v62 = vpop.f32.mrb[6].mxu0  ;;  %v2523_v6 = vadd.f32 %v389_v44, %v2503_v16  ;;  %v391_v7 = vpop.f32.mrb[6].mxu1 }
 0x100   :  { %v2525_v8 = vadd.f32 %v318_v62, %v69_v17  ;;  %v320_v9 = vpop.f32.mrb[7].mxu0  ;;  %v2528_v10 = vadd.f32 %v391_v7, %v2497_v13  ;;  %v393_v11 = vpop.f32.mrb[7].mxu1 }
 0x101   :  { %3000 = vst [vmem:[#allocation3_spill] sm:$0xff] %v2523_v6  ;;  %v2530_v12 = vadd.f32 %v320_v9, %v73_v20  ;;  %v2533_v21 = vadd.f32 %v393_v11, %v2503_v16 }
 0x102   :  { %3001 = vst [vmem:[#allocation4_spill] sm:$0xff] %v2525_v8  ;;  %3002 = vst [vmem:[#allocation5_spill] sm:$0xff] %v2528_v10 }
 0x103   :  { %3003 = vst [vmem:[#allocation6_spill] sm:$0xff] %v2530_v12  ;;  %3004 = vst [vmem:[#allocation7_spill] sm:$0xff] %v2533_v21 }
 0x105   :  { %v324_v22 = vpop.f32.mrb[8].mxu0  ;;  %v397_v24 = vpop.f32.mrb[8].mxu1 }
 0x106   :  { %v2535_v26 = vadd.f32 %v324_v22, %v69_v17  ;;  %v326_v29 = vpop.f32.mrb[9].mxu0  ;;  %v2538_v30 = vadd.f32 %v397_v24, %v2497_v13  ;;  %v399_v32 = vpop.f32.mrb[9].mxu1 }
 0x107   :  { %v2540_v44 = vadd.f32 %v326_v29, %v73_v20  ;;  %v328_v62 = vpop.f32.mrb[10].mxu0  ;;  %v2543_v7 = vadd.f32 %v399_v32, %v2503_v16  ;;  %v401_v9 = vpop.f32.mrb[10].mxu1 }
 0x108   :  { %3005 = vst [vmem:[#allocation8_spill] sm:$0xff] %v2535_v26  ;;  %3006 = vst [vmem:[#allocation9_spill] sm:$0xff] %v2538_v30  ;;  %v2545_v1 = vadd.f32 %v328_v62, %v69_v17  ;;  %v330_v11 = vpop.f32.mrb[11].mxu0  ;;  %v2548_v21 = vadd.f32 %v401_v9, %v2497_v13  ;;  %v403_v22 = vpop.f32.mrb[11].mxu1 }
 0x109   :  { %3007 = vst [vmem:[#allocation10_spill] sm:$0xff] %v2540_v44  ;;  %3008 = vst [vmem:[#allocation11_spill] sm:$0xff] %v2543_v7  ;;  %v2550_v26 = vadd.f32 %v330_v11, %v73_v20  ;;  %v2553_v24 = vadd.f32 %v403_v22, %v2503_v16 }
 0x10a   :  { %3009 = vst [vmem:[#allocation12_spill] sm:$0xff] %v2545_v1  ;;  %3010 = vst [vmem:[#allocation13_spill] sm:$0xff] %v2548_v21 }
 0x10b   :  { %3011 = vst [vmem:[#allocation14_spill] sm:$0xff] %v2550_v26  ;;  %3012 = vst [vmem:[#allocation15_spill] sm:$0xff] %v2553_v24 }
 0x10d   :  { %v334_v30 = vpop.f32.mrb[12].mxu0  ;;  %v407_v29 = vpop.f32.mrb[12].mxu1 }
 0x10e   :  { %v2555_v44 = vadd.f32 %v334_v30, %v69_v17  ;;  %v336_v12 = vpop.f32.mrb[13].mxu0  ;;  %v2558_v32 = vadd.f32 %v407_v29, %v2497_v13  ;;  %v409_v62 = vpop.f32.mrb[13].mxu1 }
 0x10f   :  { %v2560_v1 = vadd.f32 %v336_v12, %v73_v20  ;;  %v338_v7 = vpop.f32.mrb[14].mxu0  ;;  %v2563_v9 = vadd.f32 %v409_v62, %v2503_v16  ;;  %v411_v11 = vpop.f32.mrb[14].mxu1  ;;  %v305_v12 = vadd.f32 %v2499_v14, %v69_v17  ;;  %v307_v62 = vadd.f32 %v306_v18, %v73_v20 }
 0x110   :  { %3013 = vst [vmem:[#allocation16_spill] sm:$0xff] %v2555_v44  ;;  %3014 = vst [vmem:[#allocation17_spill] sm:$0xff] %v2558_v32  ;;  %v2565_v26 = vadd.f32 %v338_v7, %v69_v17  ;;  %v340_v22 = vpop.f32.mrb[15].mxu0  ;;  %v2568_v24 = vadd.f32 %v411_v11, %v2497_v13  ;;  %v413_v30 = vpop.f32.mrb[15].mxu1 }
 0x111   :  { %3015 = vst [vmem:[#allocation18_spill] sm:$0xff] %v2560_v1  ;;  %3016 = vst [vmem:[#allocation19_spill] sm:$0xff] %v2563_v9  ;;  %v2570_v44 = vadd.f32 %v340_v22, %v73_v20  ;;  %v2573_v29 = vadd.f32 %v413_v30, %v2503_v16  ;;  %v378_v1 = vadd.f32 %v2501_v15, %v2497_v13 }
 0x112   :  { %3017 = vst [vmem:[#allocation20_spill] sm:$0xff] %v2565_v26  ;;  %3018 = vst [vmem:[#allocation21_spill] sm:$0xff] %v2568_v24  ;;  %v380_v9 = vadd.f32 %v379_v19, %v2503_v16 }
 0x113   :  { %3019 = vst [vmem:[#allocation22_spill] sm:$0xff] %v2570_v44  ;;  %3020 = vst [vmem:[#allocation23_spill] sm:$0xff] %v2573_v29 }
 0x115   :  { %v681_v7 = vpop.f32.mrb[16].mxu0  ;;  %v722_v26 = vpop.f32.mrb[16].mxu1 }
 0x116   :  { %v729_v32 = vadd.f32 %v681_v7, %v305_v12  ;;  %v731_v21 = vadd.f32 %v722_v26, %v378_v1  ;;  %v683_v11 = vpop.f32.mrb[17].mxu0  ;;  %v724_v24 = vpop.f32.mrb[17].mxu1 }
 0x117   :  { %v730_v10 = vadd.f32 %v683_v11, %v307_v62  ;;  %v732_v22 = vadd.f32 %v724_v24, %v380_v9  ;;  %v685_v44 = vpop.f32.mrb[18].mxu0  ;;  %v726_v8 = vpop.f32.mrb[18].mxu1 }
 0x118   :  { %v1775_v30 = vmul.f32 -1.442695, %v729_v32  ;;  %v686_v29 = vpop.f32.mrb[19].mxu0  ;;  %v727_v6 = vpop.f32.mrb[19].mxu1  ;;  %v1777_v13 = vmul.f32 -1.442695, %v731_v21 }
 0x119   :  { %v1776_v14 = vmul.f32 -1.442695, %v730_v10  ;;  %v3021_v29 = vmov 0  }
 0x11a   :  { %1948 = vpow2.f32 %v1775_v30 }
 0x11b   :  { %1950 = vpow2.f32 %v1776_v14 }
 0x11c   :  { %1952 = vtanh.f32 %v732_v22 }
 0x11d   :  { %1954 = vpow2.f32 %v1777_v13 }
 0x124   :  { %v1949_v15 = vpop.eup %1948 }
 0x125   :  { %v742_v17 = vadd.f32 1.0, %v1949_v15  ;;  %v1951_v16 = vpop.eup %1950 }
 0x126   :  { %v743_v1 = vadd.f32 1.0, %v1951_v16  ;;  %v1953_v18 = vpop.eup %1952 }
 0x127   :  { %1956 = vrcp.f32 %v742_v17  ;;  %v1955_v19 = vpop.eup %1954 }
 0x128   :  { %1958 = vrcp.f32 %v743_v1  ;;  %v744_v44 = vadd.f32 1.0, %v1955_v19 }
 0x12a   :  { %1960 = vrcp.f32 %v744_v44 }
 0x131   :  { %v1957_v20 = vpop.eup %1956 }
 0x132   :  { %v753_v26 = vmul.f32 %v1957_v20, %v1953_v18  ;;  %v1959_v8 = vpop.eup %1958 }
 0x133   :  { %v752_v24 = vmul.f32 0.0, %v1959_v8 }
 0x134   :  { %v1961_v10 = vpop.eup %1960 }
 0x135   :  { %v2579_v6 = vadd.f32 %v753_v26, %v752_v24 }
 0x137   :  { %1962 = vtanh.f32 %v2579_v6 }
 0x141   :  { %v1963_v21 = vpop.eup %1962 }
 0x142   :  { %v756_v32 = vmul.f32 %v1963_v21, %v1961_v10 }
 0x144   :  { %v764_v9 = vpack.c.bf16 %v756_v32, %v756_v32 }
 0x146   :  { %798 = vmatmul.mubr.bf16.vlgmr.msra.gmra.mrb[20].mxu0 %v764_v9  ;;  %839 = vmatmul.mubr.bf16.vlgmr.msra.gmra.mrb[20].mxu1 %v764_v9 }
 0x147   :  { %884 = vmatpush1.bf16.msra.mxu0 %v2260_v36  ;;  %925 = vmatpush1.bf16.msra.mxu1 %v2265_v37 }
 0x148   :  { %885 = vmatprep.subr.bf16.mxu0 %v2272_v38  ;;  %926 = vmatprep.subr.bf16.mxu1 %v2277_v39 }
 0x149   :  { %915 = vmatprep.mubr.bf16.mxu0 %v3021_v29  ;;  %956 = vmatprep.mubr.bf16.mxu1 %v3021_v29 }
 0x14b   :  { %886 = vmatpush1.bf16.msra.mxu0 %v2282_v40  ;;  %927 = vmatpush1.bf16.msra.mxu1 %v2289_v41 }
 0x14c   :  { %887 = vmatprep.subr.bf16.mxu0 %v2296_v42  ;;  %928 = vmatprep.subr.bf16.mxu1 %v2301_v43 }
 0x14f   :  { %888 = vmatpush1.bf16.msra.mxu0 %v2311_v45  ;;  %929 = vmatpush1.bf16.msra.mxu1 %v2316_v46 }
 0x150   :  { %889 = vmatprep.subr.bf16.mxu0 %v2323_v47  ;;  %930 = vmatprep.subr.bf16.mxu1 %v2330_v48 }
 0x153   :  { %890 = vmatpush1.bf16.msra.mxu0 %v2335_v49  ;;  %931 = vmatpush1.bf16.msra.mxu1 %v2340_v50 }
 0x154   :  { %891 = vmatprep.subr.bf16.mxu0 %v2347_v51  ;;  %932 = vmatprep.subr.bf16.mxu1 %v2354_v52 }
 0x157   :  { %892 = vmatpush1.bf16.msra.mxu0 %v2366_v54  ;;  %933 = vmatpush1.bf16.msra.mxu1 %v2371_v55 }
 0x158   :  { %893 = vmatprep.subr.bf16.mxu0 %v2378_v56  ;;  %934 = vmatprep.subr.bf16.mxu1 %v2383_v57 }
 0x15b   :  { %894 = vmatpush1.bf16.msra.mxu0 %v2390_v58  ;;  %935 = vmatpush1.bf16.msra.mxu1 %v2395_v59 }
 0x15c   :  { %895 = vmatprep.subr.bf16.mxu0 %v2402_v60  ;;  %936 = vmatprep.subr.bf16.mxu1 %v2407_v61 }
 0x15f   :  { %896 = vmatpush1.bf16.msra.mxu0 %v2419_v63  ;;  %937 = vmatpush1.bf16.msra.mxu1 %v2424_v0 }
 0x160   :  { %897 = vmatprep.subr.bf16.mxu0 %v2431_v2  ;;  %938 = vmatprep.subr.bf16.mxu1 %v2436_v3 }
 0x163   :  { %898 = vmatpush1.bf16.msra.mxu0 %v2443_v4  ;;  %939 = vmatpush1.bf16.msra.mxu1 %v2448_v5 }
 0x164   :  { %1001 = vmatprep.subr.bf16.mxu0 %v2247_v33  ;;  %1042 = vmatprep.subr.bf16.mxu1 %v2252_v34 }
 0x219   :  { %v799_v12 = vpop.f32.mrb[20].mxu0  ;;  %v840_v62 = vpop.f32.mrb[20].mxu1 }
 0x21a   :  { %v847_v7 = vadd.f32 %v799_v12, %v2505_v23  ;;  %v849_v11 = vadd.f32 %v840_v62, %v2508_v25  ;;  %v801_v22 = vpop.f32.mrb[21].mxu0  ;;  %v842_v30 = vpop.f32.mrb[21].mxu1 }
 0x21b   :  { %v848_v14 = vadd.f32 %v801_v22, %v2510_v27  ;;  %v850_v13 = vadd.f32 %v842_v30, %v2513_v28  ;;  %v803_v15 = vpop.f32.mrb[22].mxu0  ;;  %v844_v17 = vpop.f32.mrb[22].mxu1 }
 0x21c   :  { %v1778_v16 = vmul.f32 -1.442695, %v847_v7  ;;  %v804_v1 = vpop.f32.mrb[23].mxu0  ;;  %v845_v18 = vpop.f32.mrb[23].mxu1  ;;  %v1780_v20 = vmul.f32 -1.442695, %v849_v11 }
 0x21d   :  { %v1779_v19 = vmul.f32 -1.442695, %v848_v14 }
 0x21e   :  { %1964 = vpow2.f32 %v1778_v16  ;;  %v3022_v16 = vld [vmem:[#allocation3_spill] sm:$0xff] }
 0x21f   :  { %1966 = vpow2.f32 %v1779_v19 }
 0x220   :  { %1968 = vtanh.f32 %v850_v13 }
 0x221   :  { %1970 = vpow2.f32 %v1780_v20 }
 0x228   :  { %v1965_v26 = vpop.eup %1964 }
 0x229   :  { %v860_v8 = vadd.f32 1.0, %v1965_v26  ;;  %v1967_v23 = vpop.eup %1966 }
 0x22a   :  { %v861_v25 = vadd.f32 1.0, %v1967_v23  ;;  %v1969_v27 = vpop.eup %1968 }
 0x22b   :  { %1972 = vrcp.f32 %v860_v8  ;;  %v1971_v44 = vpop.eup %1970 }
 0x22c   :  { %1974 = vrcp.f32 %v861_v25  ;;  %v862_v21 = vadd.f32 1.0, %v1971_v44 }
 0x22e   :  { %1976 = vrcp.f32 %v862_v21 }
 0x235   :  { %v1973_v28 = vpop.eup %1972 }
 0x236   :  { %v871_v24 = vmul.f32 %v1973_v28, %v1969_v27  ;;  %v1975_v10 = vpop.eup %1974 }
 0x237   :  { %v870_v32 = vmul.f32 %v1975_v10, %v2579_v6 }
 0x238   :  { %v1977_v12 = vpop.eup %1976 }
 0x239   :  { %v2621_v9 = vadd.f32 %v871_v24, %v870_v32 }
 0x23b   :  { %1978 = vtanh.f32 %v2621_v9 }
 0x245   :  { %v1979_v62 = vpop.eup %1978 }
 0x246   :  { %v874_v7 = vmul.f32 %v1979_v62, %v1977_v12 }
 0x248   :  { %v882_v11 = vpack.c.bf16 %v874_v7, %v874_v7 }
 0x24a   :  { %916 = vmatmul.mubr.bf16.vlgmr.msra.gmra.mrb[24].mxu0 %v882_v11  ;;  %957 = vmatmul.mubr.bf16.vlgmr.msra.gmra.mrb[24].mxu1 %v882_v11 }
 0x24b   :  { %1002 = vmatpush1.bf16.msra.mxu0 %v2260_v36  ;;  %1043 = vmatpush1.bf16.msra.mxu1 %v2265_v37 }
 0x24c   :  { %1003 = vmatprep.subr.bf16.mxu0 %v2272_v38  ;;  %1044 = vmatprep.subr.bf16.mxu1 %v2277_v39 }
 0x24d   :  { %1033 = vmatprep.mubr.bf16.mxu0 %v3021_v29  ;;  %1074 = vmatprep.mubr.bf16.mxu1 %v3021_v29 }
 0x24f   :  { %1004 = vmatpush1.bf16.msra.mxu0 %v2282_v40  ;;  %1045 = vmatpush1.bf16.msra.mxu1 %v2289_v41 }
 0x250   :  { %1005 = vmatprep.subr.bf16.mxu0 %v2296_v42  ;;  %1046 = vmatprep.subr.bf16.mxu1 %v2301_v43 }
 0x253   :  { %1006 = vmatpush1.bf16.msra.mxu0 %v2311_v45  ;;  %1047 = vmatpush1.bf16.msra.mxu1 %v2316_v46 }
 0x254   :  { %1007 = vmatprep.subr.bf16.mxu0 %v2323_v47  ;;  %1048 = vmatprep.subr.bf16.mxu1 %v2330_v48 }
 0x257   :  { %1008 = vmatpush1.bf16.msra.mxu0 %v2335_v49  ;;  %1049 = vmatpush1.bf16.msra.mxu1 %v2340_v50 }
 0x258   :  { %1009 = vmatprep.subr.bf16.mxu0 %v2347_v51  ;;  %1050 = vmatprep.subr.bf16.mxu1 %v2354_v52 }
 0x25b   :  { %1010 = vmatpush1.bf16.msra.mxu0 %v2366_v54  ;;  %1051 = vmatpush1.bf16.msra.mxu1 %v2371_v55 }
 0x25c   :  { %1011 = vmatprep.subr.bf16.mxu0 %v2378_v56  ;;  %1052 = vmatprep.subr.bf16.mxu1 %v2383_v57 }
 0x25f   :  { %1012 = vmatpush1.bf16.msra.mxu0 %v2390_v58  ;;  %1053 = vmatpush1.bf16.msra.mxu1 %v2395_v59 }
 0x260   :  { %1013 = vmatprep.subr.bf16.mxu0 %v2402_v60  ;;  %1054 = vmatprep.subr.bf16.mxu1 %v2407_v61 }
 0x263   :  { %1014 = vmatpush1.bf16.msra.mxu0 %v2419_v63  ;;  %1055 = vmatpush1.bf16.msra.mxu1 %v2424_v0 }
 0x264   :  { %1015 = vmatprep.subr.bf16.mxu0 %v2431_v2  ;;  %1056 = vmatprep.subr.bf16.mxu1 %v2436_v3 }
 0x267   :  { %1016 = vmatpush1.bf16.msra.mxu0 %v2443_v4  ;;  %1057 = vmatpush1.bf16.msra.mxu1 %v2448_v5 }
 0x268   :  { %1119 = vmatprep.subr.bf16.mxu0 %v2247_v33  ;;  %1160 = vmatprep.subr.bf16.mxu1 %v2252_v34 }
 0x31d   :  { %v917_v6 = vpop.f32.mrb[24].mxu0  ;;  %v958_v22 = vpop.f32.mrb[24].mxu1 }
 0x31e   :  { %v965_v30 = vadd.f32 %v917_v6, %v2515_v31  ;;  %v967_v14 = vadd.f32 %v958_v22, %v2518_v35  ;;  %v919_v13 = vpop.f32.mrb[25].mxu0  ;;  %v960_v15 = vpop.f32.mrb[25].mxu1 }
 0x31f   :  { %v966_v17 = vadd.f32 %v919_v13, %v2520_v53  ;;  %v968_v1 = vadd.f32 %v960_v15, %v3022_v16  ;;  %v921_v18 = vpop.f32.mrb[26].mxu0  ;;  %v962_v19 = vpop.f32.mrb[26].mxu1  ;;  %v3024_v15 = vld [vmem:[#allocation5_spill] sm:$0xff] }
 0x320   :  { %v1781_v20 = vmul.f32 -1.442695, %v965_v30  ;;  %v922_v26 = vpop.f32.mrb[27].mxu0  ;;  %v963_v8 = vpop.f32.mrb[27].mxu1  ;;  %v1783_v25 = vmul.f32 -1.442695, %v967_v14 }
 0x321   :  { %v1782_v23 = vmul.f32 -1.442695, %v966_v17  ;;  %v3023_v14 = vld [vmem:[#allocation4_spill] sm:$0xff]  ;;  %v3025_v18 = vld [vmem:[#allocation6_spill] sm:$0xff] }
 0x322   :  { %1980 = vpow2.f32 %v1781_v20  ;;  %v3026_v20 = vld [vmem:[#allocation7_spill] sm:$0xff] }
 0x323   :  { %1982 = vpow2.f32 %v1782_v23 }
 0x324   :  { %1984 = vtanh.f32 %v968_v1 }
 0x325   :  { %1986 = vpow2.f32 %v1783_v25 }
 0x32c   :  { %v1981_v27 = vpop.eup %1980 }
 0x32d   :  { %v978_v44 = vadd.f32 1.0, %v1981_v27  ;;  %v1983_v31 = vpop.eup %1982 }
 0x32e   :  { %v979_v35 = vadd.f32 1.0, %v1983_v31  ;;  %v1985_v53 = vpop.eup %1984 }
 0x32f   :  { %1988 = vrcp.f32 %v978_v44  ;;  %v1987_v28 = vpop.eup %1986 }
 0x330   :  { %1990 = vrcp.f32 %v979_v35  ;;  %v980_v32 = vadd.f32 1.0, %v1987_v28 }
 0x332   :  { %1992 = vrcp.f32 %v980_v32 }
 0x339   :  { %v1989_v24 = vpop.eup %1988 }
 0x33a   :  { %v989_v10 = vmul.f32 %v1989_v24, %v1985_v53  ;;  %v1991_v21 = vpop.eup %1990 }
 0x33b   :  { %v988_v12 = vmul.f32 %v1991_v21, %v2621_v9 }
 0x33c   :  { %v1993_v7 = vpop.eup %1992 }
 0x33d   :  { %v2663_v62 = vadd.f32 %v989_v10, %v988_v12 }
 0x33f   :  { %1994 = vtanh.f32 %v2663_v62 }
 0x349   :  { %v1995_v11 = vpop.eup %1994 }
 0x34a   :  { %v992_v6 = vmul.f32 %v1995_v11, %v1993_v7 }
 0x34c   :  { %v1000_v22 = vpack.c.bf16 %v992_v6, %v992_v6 }
 0x34e   :  { %1034 = vmatmul.mubr.bf16.vlgmr.msra.gmra.mrb[28].mxu0 %v1000_v22  ;;  %1075 = vmatmul.mubr.bf16.vlgmr.msra.gmra.mrb[28].mxu1 %v1000_v22 }
 0x34f   :  { %1120 = vmatpush1.bf16.msra.mxu0 %v2260_v36  ;;  %1161 = vmatpush1.bf16.msra.mxu1 %v2265_v37 }
 0x350   :  { %1121 = vmatprep.subr.bf16.mxu0 %v2272_v38  ;;  %1162 = vmatprep.subr.bf16.mxu1 %v2277_v39 }
 0x351   :  { %1151 = vmatprep.mubr.bf16.mxu0 %v3021_v29  ;;  %1192 = vmatprep.mubr.bf16.mxu1 %v3021_v29 }
 0x353   :  { %1122 = vmatpush1.bf16.msra.mxu0 %v2282_v40  ;;  %1163 = vmatpush1.bf16.msra.mxu1 %v2289_v41 }
 0x354   :  { %1123 = vmatprep.subr.bf16.mxu0 %v2296_v42  ;;  %1164 = vmatprep.subr.bf16.mxu1 %v2301_v43 }
 0x357   :  { %1124 = vmatpush1.bf16.msra.mxu0 %v2311_v45  ;;  %1165 = vmatpush1.bf16.msra.mxu1 %v2316_v46 }
 0x358   :  { %1125 = vmatprep.subr.bf16.mxu0 %v2323_v47  ;;  %1166 = vmatprep.subr.bf16.mxu1 %v2330_v48 }
 0x35b   :  { %1126 = vmatpush1.bf16.msra.mxu0 %v2335_v49  ;;  %1167 = vmatpush1.bf16.msra.mxu1 %v2340_v50 }
 0x35c   :  { %1127 = vmatprep.subr.bf16.mxu0 %v2347_v51  ;;  %1168 = vmatprep.subr.bf16.mxu1 %v2354_v52 }
 0x35f   :  { %1128 = vmatpush1.bf16.msra.mxu0 %v2366_v54  ;;  %1169 = vmatpush1.bf16.msra.mxu1 %v2371_v55 }
 0x360   :  { %1129 = vmatprep.subr.bf16.mxu0 %v2378_v56  ;;  %1170 = vmatprep.subr.bf16.mxu1 %v2383_v57 }
 0x363   :  { %1130 = vmatpush1.bf16.msra.mxu0 %v2390_v58  ;;  %1171 = vmatpush1.bf16.msra.mxu1 %v2395_v59 }
 0x364   :  { %1131 = vmatprep.subr.bf16.mxu0 %v2402_v60  ;;  %1172 = vmatprep.subr.bf16.mxu1 %v2407_v61 }
 0x367   :  { %1132 = vmatpush1.bf16.msra.mxu0 %v2419_v63  ;;  %1173 = vmatpush1.bf16.msra.mxu1 %v2424_v0 }
 0x368   :  { %1133 = vmatprep.subr.bf16.mxu0 %v2431_v2  ;;  %1174 = vmatprep.subr.bf16.mxu1 %v2436_v3 }
 0x36b   :  { %1134 = vmatpush1.bf16.msra.mxu0 %v2443_v4  ;;  %1175 = vmatpush1.bf16.msra.mxu1 %v2448_v5 }
 0x36c   :  { %1237 = vmatprep.subr.bf16.mxu0 %v2247_v33  ;;  %1278 = vmatprep.subr.bf16.mxu1 %v2252_v34 }
 0x421   :  { %v1035_v9 = vpop.f32.mrb[28].mxu0  ;;  %v1076_v30 = vpop.f32.mrb[28].mxu1 }
 0x422   :  { %v1083_v13 = vadd.f32 %v1035_v9, %v3023_v14  ;;  %v1085_v17 = vadd.f32 %v1076_v30, %v3024_v15  ;;  %v1037_v16 = vpop.f32.mrb[29].mxu0  ;;  %v1078_v1 = vpop.f32.mrb[29].mxu1 }
 0x423   :  { %v1084_v19 = vadd.f32 %v1037_v16, %v3025_v18  ;;  %v1086_v26 = vadd.f32 %v1078_v1, %v3026_v20  ;;  %v1039_v8 = vpop.f32.mrb[30].mxu0  ;;  %v1080_v23 = vpop.f32.mrb[30].mxu1 }
 0x424   :  { %v1784_v25 = vmul.f32 -1.442695, %v1083_v13  ;;  %v1040_v27 = vpop.f32.mrb[31].mxu0  ;;  %v1081_v44 = vpop.f32.mrb[31].mxu1  ;;  %v1786_v34 = vmul.f32 -1.442695, %v1085_v17 }
 0x425   :  { %v1785_v33 = vmul.f32 -1.442695, %v1084_v19 }
 0x426   :  { %1996 = vpow2.f32 %v1784_v25 }
 0x427   :  { %1998 = vpow2.f32 %v1785_v33 }
 0x428   :  { %2000 = vtanh.f32 %v1086_v26 }
 0x429   :  { %2002 = vpow2.f32 %v1786_v34 }
 0x430   :  { %v1997_v31 = vpop.eup %1996 }
 0x431   :  { %v1096_v35 = vadd.f32 1.0, %v1997_v31  ;;  %v1999_v53 = vpop.eup %1998 }
 0x432   :  { %v1097_v28 = vadd.f32 1.0, %v1999_v53  ;;  %v2001_v24 = vpop.eup %2000  ;;  %v2763_v53 = vld [vmem:[%s2993_s2] ss:$16 sps:$4 sm:$0xff]  }
 0x433   :  { %2004 = vrcp.f32 %v1096_v35  ;;  %v2003_v10 = vpop.eup %2002 }
 0x434   :  { %2006 = vrcp.f32 %v1097_v28  ;;  %v1098_v7 = vadd.f32 1.0, %v2003_v10  ;;  %v2769_v28 = vld [vmem:[%s2993_s2 + $0x8] ss:$16 sps:$4 sm:$0xff]   ;;  %v2781_v10 = vld [vmem:[%s2993_s2 + $0x2c] ss:$16 sps:$4 sm:$0xff]  }
 0x436   :  { %2008 = vrcp.f32 %v1098_v7  ;;  %v2807_v7 = vld [vmem:[%s2993_s2 + $0x4c] ss:$16 sps:$4 sm:$0xff]  }
 0x43d   :  { %v2005_v21 = vpop.eup %2004 }
 0x43e   :  { %v1107_v32 = vmul.f32 %v2005_v21, %v2001_v24  ;;  %v2007_v12 = vpop.eup %2006  ;;  %v2775_v24 = vld [vmem:[%s2993_s2 + $0x24] ss:$16 sps:$4 sm:$0xff]   ;;  %v2789_v21 = vld [vmem:[%s2993_s2 + $0x20] ss:$16 sps:$4 sm:$0xff]  }
 0x43f   :  { %v1106_v11 = vmul.f32 %v2007_v12, %v2663_v62  ;;  %v2801_v12 = vld [vmem:[%s2993_s2 + $0x44] ss:$16 sps:$4 sm:$0xff]  }
 0x440   :  { %v2009_v22 = vpop.eup %2008 }
 0x441   :  { %v2705_v6 = vadd.f32 %v1107_v32, %v1106_v11  ;;  %v2795_v32 = vld [vmem:[%s2993_s2 + $0x28] ss:$16 sps:$4 sm:$0xff]   ;;  %v2813_v11 = vld [vmem:[%s2993_s2 + $0x40] ss:$16 sps:$4 sm:$0xff]  }
 0x443   :  { %2010 = vtanh.f32 %v2705_v6 }
 0x44d   :  { %v2011_v9 = vpop.eup %2010 }
 0x44e   :  { %v1110_v30 = vmul.f32 %v2011_v9, %v2009_v22  ;;  %v2825_v22 = vld [vmem:[%s2993_s2 + $0x64] ss:$16 sps:$4 sm:$0xff]   ;;  %v2831_v9 = vld [vmem:[%s2993_s2 + $0x6c] ss:$16 sps:$4 sm:$0xff]  }
 0x450   :  { %v1118_v14 = vpack.c.bf16 %v1110_v30, %v1110_v30  ;;  %v2837_v30 = vld [vmem:[%s2993_s2 + $0x60] ss:$16 sps:$4 sm:$0xff]  }
 0x452   :  { %1152 = vmatmul.mubr.bf16.vlgmr.msra.gmra.mrb[32].mxu0 %v1118_v14  ;;  %1193 = vmatmul.mubr.bf16.vlgmr.msra.gmra.mrb[32].mxu1 %v1118_v14  ;;  %v2843_v14 = vld [vmem:[%s2993_s2 + $0x68] ss:$16 sps:$4 sm:$0xff]  }
 0x453   :  { %1238 = vmatpush1.bf16.msra.mxu0 %v2260_v36  ;;  %1279 = vmatpush1.bf16.msra.mxu1 %v2265_v37  ;;  %v2743_v36 = vld [vmem:[%s2993_s2 + $0x4] ss:$16 sps:$4 sm:$0xff]   ;;  %v2749_v37 = vld [vmem:[%s2993_s2 + $0xc] ss:$16 sps:$4 sm:$0xff]  }
 0x454   :  { %1239 = vmatprep.subr.bf16.mxu0 %v2272_v38  ;;  %1280 = vmatprep.subr.bf16.mxu1 %v2277_v39 }
 0x455   :  { %1269 = vmatprep.mubr.bf16.mxu0 %v3021_v29  ;;  %1310 = vmatprep.mubr.bf16.mxu1 %v3021_v29 }
 0x457   :  { %1240 = vmatpush1.bf16.msra.mxu0 %v2282_v40  ;;  %1281 = vmatpush1.bf16.msra.mxu1 %v2289_v41  ;;  %v3027_v40 = vld [vmem:[#allocation8_spill] sm:$0xff] }
 0x458   :  { %1241 = vmatprep.subr.bf16.mxu0 %v2296_v42  ;;  %1282 = vmatprep.subr.bf16.mxu1 %v2301_v43  ;;  %v3028_v42 = vld [vmem:[#allocation9_spill] sm:$0xff] }
 0x45b   :  { %1242 = vmatpush1.bf16.msra.mxu0 %v2311_v45  ;;  %1283 = vmatpush1.bf16.msra.mxu1 %v2316_v46 }
 0x45c   :  { %1243 = vmatprep.subr.bf16.mxu0 %v2323_v47  ;;  %1284 = vmatprep.subr.bf16.mxu1 %v2330_v48  ;;  %v3029_v47 = vld [vmem:[#allocation10_spill] sm:$0xff] }
 0x45f   :  { %1244 = vmatpush1.bf16.msra.mxu0 %v2335_v49  ;;  %1285 = vmatpush1.bf16.msra.mxu1 %v2340_v50  ;;  %v3030_v49 = vld [vmem:[#allocation11_spill] sm:$0xff] }
 0x460   :  { %1245 = vmatprep.subr.bf16.mxu0 %v2347_v51  ;;  %1286 = vmatprep.subr.bf16.mxu1 %v2354_v52 }
 0x463   :  { %1246 = vmatpush1.bf16.msra.mxu0 %v2366_v54  ;;  %1287 = vmatpush1.bf16.msra.mxu1 %v2371_v55 }
 0x464   :  { %1247 = vmatprep.subr.bf16.mxu0 %v2378_v56  ;;  %1288 = vmatprep.subr.bf16.mxu1 %v2383_v57 }
 0x467   :  { %1248 = vmatpush1.bf16.msra.mxu0 %v2390_v58  ;;  %1289 = vmatpush1.bf16.msra.mxu1 %v2395_v59 }
 0x468   :  { %1249 = vmatprep.subr.bf16.mxu0 %v2402_v60  ;;  %1290 = vmatprep.subr.bf16.mxu1 %v2407_v61 }
 0x46b   :  { %1250 = vmatpush1.bf16.msra.mxu0 %v2419_v63  ;;  %1291 = vmatpush1.bf16.msra.mxu1 %v2424_v0 }
 0x46c   :  { %1251 = vmatprep.subr.bf16.mxu0 %v2431_v2  ;;  %1292 = vmatprep.subr.bf16.mxu1 %v2436_v3 }
 0x46f   :  { %1252 = vmatpush1.bf16.msra.mxu0 %v2443_v4  ;;  %1293 = vmatpush1.bf16.msra.mxu1 %v2448_v5 }
 0x470   :  { %1355 = vmatprep.subr.bf16.mxu0 %v2743_v36  ;;  %1396 = vmatprep.subr.bf16.mxu1 %v2749_v37 }
 0x525   :  { %v1153_v38 = vpop.f32.mrb[32].mxu0  ;;  %v1194_v39 = vpop.f32.mrb[32].mxu1 }
 0x526   :  { %v1201_v41 = vadd.f32 %v1153_v38, %v3027_v40  ;;  %v1203_v43 = vadd.f32 %v1194_v39, %v3028_v42  ;;  %v1155_v45 = vpop.f32.mrb[33].mxu0  ;;  %v1196_v46 = vpop.f32.mrb[33].mxu1  ;;  %v2849_v38 = vld [vmem:[%s2993_s2 + $0x84] ss:$16 sps:$4 sm:$0xff]   ;;  %v2855_v39 = vld [vmem:[%s2993_s2 + $0x8c] ss:$16 sps:$4 sm:$0xff]  }
 0x527   :  { %v1202_v48 = vadd.f32 %v1155_v45, %v3029_v47  ;;  %v1204_v50 = vadd.f32 %v1196_v46, %v3030_v49  ;;  %v1157_v51 = vpop.f32.mrb[34].mxu0  ;;  %v1198_v52 = vpop.f32.mrb[34].mxu1  ;;  %v2861_v40 = vld [vmem:[%s2993_s2 + $0x80] ss:$16 sps:$4 sm:$0xff]   ;;  %v3033_v42 = vld [vmem:[#allocation14_spill] sm:$0xff] }
 0x528   :  { %v1787_v54 = vmul.f32 -1.442695, %v1201_v41  ;;  %v1158_v55 = vpop.f32.mrb[35].mxu0  ;;  %v1199_v62 = vpop.f32.mrb[35].mxu1  ;;  %v1789_v15 = vmul.f32 -1.442695, %v1203_v43 }
 0x529   :  { %v1788_v13 = vmul.f32 -1.442695, %v1202_v48  ;;  %v2867_v41 = vld [vmem:[%s2993_s2 + $0x88] ss:$16 sps:$4 sm:$0xff]   ;;  %v3034_v43 = vld [vmem:[#allocation15_spill] sm:$0xff] }
 0x52a   :  { %2012 = vpow2.f32 %v1787_v54 }
 0x52b   :  { %2014 = vpow2.f32 %v1788_v13 }
 0x52c   :  { %2016 = vtanh.f32 %v1204_v50 }
 0x52d   :  { %2018 = vpow2.f32 %v1789_v15 }
 0x534   :  { %v2013_v17 = vpop.eup %2012 }
 0x535   :  { %v1214_v16 = vadd.f32 1.0, %v2013_v17  ;;  %v2015_v1 = vpop.eup %2014 }
 0x536   :  { %v1215_v18 = vadd.f32 1.0, %v2015_v1  ;;  %v2017_v19 = vpop.eup %2016 }
 0x537   :  { %2020 = vrcp.f32 %v1214_v16  ;;  %v2019_v20 = vpop.eup %2018 }
 0x538   :  { %2022 = vrcp.f32 %v1215_v18  ;;  %v1216_v25 = vadd.f32 1.0, %v2019_v20 }
 0x53a   :  { %2024 = vrcp.f32 %v1216_v25  ;;  %v2100_v25 = vld [vmem:[%s2993_s2 + $0xc4] ss:$16 sps:$4 sm:$0xff]  }
 0x541   :  { %v2021_v26 = vpop.eup %2020 }
 0x542   :  { %v1225_v8 = vmul.f32 %v2021_v26, %v2017_v19  ;;  %v2023_v23 = vpop.eup %2022  ;;  %v2097_v26 = vld [vmem:[%s2993_s2 + $0xac] ss:$16 sps:$4 sm:$0xff]  }
 0x543   :  { %v1224_v27 = vmul.f32 %v2023_v23, %v2705_v6  ;;  %v2819_v6 = vld [vmem:[%s2993_s2 + $0x48] ss:$16 sps:$4 sm:$0xff]  }
 0x544   :  { %v2025_v33 = vpop.eup %2024  ;;  %v2099_v23 = vld [vmem:[%s2993_s2 + $0xa8] ss:$16 sps:$4 sm:$0xff]  }
 0x545   :  { %v2757_v44 = vadd.f32 %v1225_v8, %v1224_v27  ;;  %v2098_v8 = vld [vmem:[%s2993_s2 + $0xa0] ss:$16 sps:$4 sm:$0xff]   ;;  %v2101_v27 = vld [vmem:[%s2993_s2 + $0xcc] ss:$16 sps:$4 sm:$0xff]  }
 0x547   :  { %2026 = vtanh.f32 %v2757_v44 }
 0x551   :  { %v2027_v34 = vpop.eup %2026 }
 0x552   :  { %v1228_v31 = vmul.f32 %v2027_v34, %v2025_v33  ;;  %v2103_v33 = vld [vmem:[%s2993_s2 + $0xc8] ss:$16 sps:$4 sm:$0xff]   ;;  %v2104_v34 = vld [vmem:[%s2993_s2 + $0xe4] ss:$16 sps:$4 sm:$0xff]  }
 0x554   :  { %v1236_v35 = vpack.c.bf16 %v1228_v31, %v1228_v31  ;;  %v2105_v31 = vld [vmem:[%s2993_s2 + $0xec] ss:$16 sps:$4 sm:$0xff]  }
 0x556   :  { %1270 = vmatmul.mubr.bf16.vlgmr.msra.gmra.mrb[36].mxu0 %v1236_v35  ;;  %1311 = vmatmul.mubr.bf16.vlgmr.msra.gmra.mrb[36].mxu1 %v1236_v35  ;;  %v2106_v35 = vld [vmem:[%s2993_s2 + $0xe0] ss:$16 sps:$4 sm:$0xff]  }
 0x557   :  { %1356 = vmatpush1.bf16.msra.mxu0 %v2763_v53  ;;  %1397 = vmatpush1.bf16.msra.mxu1 %v2769_v28 }
 0x558   :  { %1357 = vmatprep.subr.bf16.mxu0 %v2775_v24  ;;  %1398 = vmatprep.subr.bf16.mxu1 %v2781_v10 }
 0x559   :  { %1387 = vmatprep.mubr.bf16.mxu0 %v3021_v29  ;;  %1428 = vmatprep.mubr.bf16.mxu1 %v3021_v29 }
 0x55b   :  { %1358 = vmatpush1.bf16.msra.mxu0 %v2789_v21  ;;  %1399 = vmatpush1.bf16.msra.mxu1 %v2795_v32 }
 0x55c   :  { %1359 = vmatprep.subr.bf16.mxu0 %v2801_v12  ;;  %1400 = vmatprep.subr.bf16.mxu1 %v2807_v7 }
 0x55f   :  { %1360 = vmatpush1.bf16.msra.mxu0 %v2813_v11  ;;  %1401 = vmatpush1.bf16.msra.mxu1 %v2819_v6 }
 0x560   :  { %1361 = vmatprep.subr.bf16.mxu0 %v2825_v22  ;;  %1402 = vmatprep.subr.bf16.mxu1 %v2831_v9 }
 0x563   :  { %1362 = vmatpush1.bf16.msra.mxu0 %v2837_v30  ;;  %1403 = vmatpush1.bf16.msra.mxu1 %v2843_v14 }
 0x564   :  { %1363 = vmatprep.subr.bf16.mxu0 %v2849_v38  ;;  %1404 = vmatprep.subr.bf16.mxu1 %v2855_v39 }
 0x567   :  { %1364 = vmatpush1.bf16.msra.mxu0 %v2861_v40  ;;  %1405 = vmatpush1.bf16.msra.mxu1 %v2867_v41 }
 0x568   :  { %1365 = vmatprep.subr.bf16.mxu0 %v2378_v56  ;;  %1406 = vmatprep.subr.bf16.mxu1 %v2383_v57 }
 0x56b   :  { %1366 = vmatpush1.bf16.msra.mxu0 %v2390_v58  ;;  %1407 = vmatpush1.bf16.msra.mxu1 %v2395_v59  ;;  %v3031_v58 = vld [vmem:[#allocation12_spill] sm:$0xff] }
 0x56c   :  { %1367 = vmatprep.subr.bf16.mxu0 %v2402_v60  ;;  %1408 = vmatprep.subr.bf16.mxu1 %v2407_v61  ;;  %v3032_v60 = vld [vmem:[#allocation13_spill] sm:$0xff] }
 0x56f   :  { %1368 = vmatpush1.bf16.msra.mxu0 %v2419_v63  ;;  %1409 = vmatpush1.bf16.msra.mxu1 %v2424_v0 }
 0x570   :  { %1369 = vmatprep.subr.bf16.mxu0 %v2431_v2  ;;  %1410 = vmatprep.subr.bf16.mxu1 %v2436_v3 }
 0x573   :  { %1370 = vmatpush1.bf16.msra.mxu0 %v2443_v4  ;;  %1411 = vmatpush1.bf16.msra.mxu1 %v2448_v5 }
 0x574   :  { %1473 = vmatprep.subr.bf16.mxu0 %v2743_v36  ;;  %1514 = vmatprep.subr.bf16.mxu1 %v2749_v37 }
 0x629   :  { %v1271_v56 = vpop.f32.mrb[36].mxu0  ;;  %v1312_v57 = vpop.f32.mrb[36].mxu1 }
 0x62a   :  { %v1319_v59 = vadd.f32 %v1271_v56, %v3031_v58  ;;  %v1321_v61 = vadd.f32 %v1312_v57, %v3032_v60  ;;  %v1273_v63 = vpop.f32.mrb[37].mxu0  ;;  %v1314_v0 = vpop.f32.mrb[37].mxu1 }
 0x62b   :  { %v1320_v2 = vadd.f32 %v1273_v63, %v3033_v42  ;;  %v1322_v3 = vadd.f32 %v1314_v0, %v3034_v43  ;;  %v1275_v45 = vpop.f32.mrb[38].mxu0  ;;  %v1316_v4 = vpop.f32.mrb[38].mxu1 }
 0x62c   :  { %v1790_v46 = vmul.f32 -1.442695, %v1319_v59  ;;  %v1276_v5 = vpop.f32.mrb[39].mxu0  ;;  %v1317_v47 = vpop.f32.mrb[39].mxu1  ;;  %v1792_v37 = vmul.f32 -1.442695, %v1321_v61 }
 0x62d   :  { %v1791_v36 = vmul.f32 -1.442695, %v1320_v2 }
 0x62e   :  { %2028 = vpow2.f32 %v1790_v46 }
 0x62f   :  { %2030 = vpow2.f32 %v1791_v36 }
 0x630   :  { %2032 = vtanh.f32 %v1322_v3 }
 0x631   :  { %2034 = vpow2.f32 %v1792_v37  ;;  %v1940_v37 = vld [vmem:[%s2995_s4] sm:$0xff]  }
 0x638   :  { %v2029_v48 = vpop.eup %2028 }
 0x639   :  { %v1332_v49 = vadd.f32 1.0, %v2029_v48  ;;  %v2031_v50 = vpop.eup %2030  ;;  %v2109_v48 = vmov 0.0  }
 0x63a   :  { %v1333_v51 = vadd.f32 1.0, %v2031_v50  ;;  %v2033_v52 = vpop.eup %2032  ;;  %v1942_v50 = vld [vmem:[%s2995_s4 + $0x10] sm:$0xff]  }
 0x63b   :  { %2036 = vrcp.f32 %v1332_v49  ;;  %v2035_v54 = vpop.eup %2034  ;;  %v1941_v49 = vld [vmem:[%s2995_s4 + $0x8] sm:$0xff]  }
 0x63c   :  { %2038 = vrcp.f32 %v1333_v51  ;;  %v1334_v15 = vadd.f32 1.0, %v2035_v54  ;;  %v1943_v51 = vld [vmem:[%s2995_s4 + $0x18] sm:$0xff]   ;;  %v1945_v54 = vld [vmem:[%s2995_s4 + $0x28] sm:$0xff]  }
 0x63e   :  { %2040 = vrcp.f32 %v1334_v15 }
 0x645   :  { %v2037_v55 = vpop.eup %2036 }
 0x646   :  { %v1343_v62 = vmul.f32 %v2037_v55, %v2033_v52  ;;  %v2039_v13 = vpop.eup %2038  ;;  %v1944_v52 = vld [vmem:[%s2995_s4 + $0x20] sm:$0xff]   ;;  %v1946_v55 = vld [vmem:[%s2995_s4 + $0x30] sm:$0xff]  }
 0x647   :  { %v1342_v17 = vmul.f32 %v2039_v13, %v2757_v44  ;;  %v2102_v44 = vld [vmem:[%s2993_s2 + $0xc0] ss:$16 sps:$4 sm:$0xff]  }
 0x648   :  { %v2041_v1 = vpop.eup %2040 }
 0x649   :  { %v2889_v16 = vadd.f32 %v1343_v62, %v1342_v17  ;;  %v1947_v62 = vld [vmem:[%s2995_s4 + $0x38] sm:$0xff]   ;;  %v3039_v17 = vld [vmem:[#allocation20_spill] sm:$0xff] }
 0x64b   :  { %2042 = vtanh.f32 %v2889_v16 }
 0x655   :  { %v2043_v18 = vpop.eup %2042 }
 0x656   :  { %v1346_v19 = vmul.f32 %v2043_v18, %v2041_v1  ;;  %v3040_v1 = vld [vmem:[#allocation21_spill] sm:$0xff] }
 0x658   :  { %v1354_v20 = vpack.c.bf16 %v1346_v19, %v1346_v19 }
 0x65a   :  { %1388 = vmatmul.mubr.bf16.vlgmr.msra.gmra.mrb[40].mxu0 %v1354_v20  ;;  %1429 = vmatmul.mubr.bf16.vlgmr.msra.gmra.mrb[40].mxu1 %v1354_v20 }
 0x65b   :  { %1474 = vmatpush1.bf16.msra.mxu0 %v2763_v53  ;;  %1515 = vmatpush1.bf16.msra.mxu1 %v2769_v28  ;;  %v2107_v53 = vld [vmem:[%s2993_s2 + $0xe8] ss:$16 sps:$4 sm:$0xff]  }
 0x65c   :  { %1475 = vmatprep.subr.bf16.mxu0 %v2775_v24  ;;  %1516 = vmatprep.subr.bf16.mxu1 %v2781_v10  ;;  %v3035_v10 = vld [vmem:[#allocation16_spill] sm:$0xff] }
 0x65d   :  { %1505 = vmatprep.mubr.bf16.mxu0 %v3021_v29  ;;  %1546 = vmatprep.mubr.bf16.mxu1 %v3021_v29  ;;  %v2096_v29 = vld [vmem:[%s2993_s2 + $0xa4] ss:$16 sps:$4 sm:$0xff]  }
 0x65f   :  { %1476 = vmatpush1.bf16.msra.mxu0 %v2789_v21  ;;  %1517 = vmatpush1.bf16.msra.mxu1 %v2795_v32  ;;  %v3036_v32 = vld [vmem:[#allocation17_spill] sm:$0xff] }
 0x660   :  { %1477 = vmatprep.subr.bf16.mxu0 %v2801_v12  ;;  %1518 = vmatprep.subr.bf16.mxu1 %v2807_v7 }
 0x663   :  { %1478 = vmatpush1.bf16.msra.mxu0 %v2813_v11  ;;  %1519 = vmatpush1.bf16.msra.mxu1 %v2819_v6  ;;  %v3037_v6 = vld [vmem:[#allocation18_spill] sm:$0xff] }
 0x664   :  { %1479 = vmatprep.subr.bf16.mxu0 %v2825_v22  ;;  %1520 = vmatprep.subr.bf16.mxu1 %v2831_v9  ;;  %v3038_v9 = vld [vmem:[#allocation19_spill] sm:$0xff] }
 0x667   :  { %1480 = vmatpush1.bf16.msra.mxu0 %v2837_v30  ;;  %1521 = vmatpush1.bf16.msra.mxu1 %v2843_v14 }
 0x668   :  { %1481 = vmatprep.subr.bf16.mxu0 %v2849_v38  ;;  %1522 = vmatprep.subr.bf16.mxu1 %v2855_v39 }
 0x66b   :  { %1482 = vmatpush1.bf16.msra.mxu0 %v2861_v40  ;;  %1523 = vmatpush1.bf16.msra.mxu1 %v2867_v41 }
 0x66c   :  { %1483 = vmatprep.subr.bf16.mxu0 %v2096_v29  ;;  %1524 = vmatprep.subr.bf16.mxu1 %v2097_v26  ;;  %v3041_v29 = vld [vmem:[#allocation22_spill] sm:$0xff] }
 0x66f   :  { %1484 = vmatpush1.bf16.msra.mxu0 %v2098_v8  ;;  %1525 = vmatpush1.bf16.msra.mxu1 %v2099_v23  ;;  %v3042_v8 = vld [vmem:[#allocation23_spill] sm:$0xff] }
 0x670   :  { %1485 = vmatprep.subr.bf16.mxu0 %v2100_v25  ;;  %1526 = vmatprep.subr.bf16.mxu1 %v2101_v27 }
 0x673   :  { %1486 = vmatpush1.bf16.msra.mxu0 %v2102_v44  ;;  %1527 = vmatpush1.bf16.msra.mxu1 %v2103_v33 }
 0x674   :  { %1487 = vmatprep.subr.bf16.mxu0 %v2104_v34  ;;  %1528 = vmatprep.subr.bf16.mxu1 %v2105_v31 }
 0x677   :  { %1488 = vmatpush1.bf16.msra.mxu0 %v2106_v35  ;;  %1529 = vmatpush1.bf16.msra.mxu1 %v2107_v53 }
 0x678   :  { %1817 = vmatprep.subr.bf16.mxu0 %v2109_v48 }
 0x72d   :  { %v1389_v28 = vpop.f32.mrb[40].mxu0  ;;  %v1430_v24 = vpop.f32.mrb[40].mxu1 }
 0x72e   :  { %v1437_v21 = vadd.f32 %v1389_v28, %v3035_v10  ;;  %v1439_v12 = vadd.f32 %v1430_v24, %v3036_v32  ;;  %v1391_v7 = vpop.f32.mrb[41].mxu0  ;;  %v1432_v11 = vpop.f32.mrb[41].mxu1 }
 0x72f   :  { %v1438_v22 = vadd.f32 %v1391_v7, %v3037_v6  ;;  %v1440_v30 = vadd.f32 %v1432_v11, %v3038_v9  ;;  %v1393_v14 = vpop.f32.mrb[42].mxu0  ;;  %v1434_v38 = vpop.f32.mrb[42].mxu1 }
 0x730   :  { %v1793_v39 = vmul.f32 -1.442695, %v1437_v21  ;;  %v1394_v40 = vpop.f32.mrb[43].mxu0  ;;  %v1435_v41 = vpop.f32.mrb[43].mxu1  ;;  %v1795_v57 = vmul.f32 -1.442695, %v1439_v12 }
 0x731   :  { %v1794_v56 = vmul.f32 -1.442695, %v1438_v22  ;;  %v1799_v40 = vld [vmem:[%s2996_s5] ss:$0 sm:$0xff] }
 0x732   :  { %2044 = vpow2.f32 %v1793_v39 }
 0x733   :  { %2046 = vpow2.f32 %v1794_v56 }
 0x734   :  { %2048 = vtanh.f32 %v1440_v30 }
 0x735   :  { %2050 = vpow2.f32 %v1795_v57 }
 0x73c   :  { %v2045_v58 = vpop.eup %2044 }
 0x73d   :  { %v1450_v59 = vadd.f32 1.0, %v2045_v58  ;;  %v2047_v60 = vpop.eup %2046 }
 0x73e   :  { %v1451_v61 = vadd.f32 1.0, %v2047_v60  ;;  %v2049_v63 = vpop.eup %2048 }
 0x73f   :  { %2052 = vrcp.f32 %v1450_v59  ;;  %v2051_v0 = vpop.eup %2050 }
 0x740   :  { %2054 = vrcp.f32 %v1451_v61  ;;  %v1452_v3 = vadd.f32 1.0, %v2051_v0 }
 0x742   :  { %2056 = vrcp.f32 %v1452_v3 }
 0x749   :  { %v2053_v42 = vpop.eup %2052 }
 0x74a   :  { %v1461_v2 = vmul.f32 %v2053_v42, %v2049_v63  ;;  %v2055_v43 = vpop.eup %2054 }
 0x74b   :  { %v1460_v45 = vmul.f32 %v2055_v43, %v2889_v16 }
 0x74c   :  { %v2057_v46 = vpop.eup %2056 }
 0x74d   :  { %v2953_v4 = vadd.f32 %v1461_v2, %v1460_v45 }
 0x74f   :  { %2058 = vtanh.f32 %v2953_v4 }
 0x759   :  { %v2059_v5 = vpop.eup %2058 }
 0x75a   :  { %v1464_v47 = vmul.f32 %v2059_v5, %v2057_v46 }
 0x75c   :  { %v1472_v36 = vpack.c.bf16 %v1464_v47, %v1464_v47 }
 0x75e   :  { %1506 = vmatmul.mubr.bf16.vlgmr.msra.gmra.mrb[44].mxu0 %v1472_v36  ;;  %1547 = vmatmul.mubr.bf16.vlgmr.msra.gmra.mrb[44].mxu1 %v1472_v36 }
 0x75f   :  { %1818 = vmatpush3.bf16.msra.mxu0 %v1940_v37  ;;  %1833 = vmatprep.mubr.msk.bf16.mxu0 %vm2110_vm0, %v2109_v48 }
 0x760   :  { %1819 = vmatprep.subr.bf16.mxu0 %v2109_v48 }
 0x763   :  { %1820 = vmatpush3.bf16.msra.mxu0 %v1941_v49 }
 0x764   :  { %1821 = vmatprep.subr.bf16.mxu0 %v2109_v48 }
 0x767   :  { %1822 = vmatpush3.bf16.msra.mxu0 %v1942_v50 }
 0x768   :  { %1823 = vmatprep.subr.bf16.mxu0 %v2109_v48 }
 0x76b   :  { %1824 = vmatpush3.bf16.msra.mxu0 %v1943_v51 }
 0x76c   :  { %1825 = vmatprep.subr.bf16.mxu0 %v2109_v48 }
 0x76f   :  { %1826 = vmatpush3.bf16.msra.mxu0 %v1944_v52 }
 0x770   :  { %1827 = vmatprep.subr.bf16.mxu0 %v2109_v48 }
 0x773   :  { %1828 = vmatpush3.bf16.msra.mxu0 %v1945_v54 }
 0x774   :  { %1829 = vmatprep.subr.bf16.mxu0 %v2109_v48 }
 0x777   :  { %1830 = vmatpush3.bf16.msra.mxu0 %v1946_v55 }
 0x778   :  { %1831 = vmatprep.subr.bf16.mxu0 %v2109_v48 }
 0x77b   :  { %1832 = vmatpush3.bf16.msra.mxu0 %v1947_v62 }
 0x831   :  { %v1507_v13 = vpop.f32.mrb[44].mxu0  ;;  %v1548_v15 = vpop.f32.mrb[44].mxu1 }
 0x832   :  { %v1555_v16 = vadd.f32 %v1507_v13, %v3039_v17  ;;  %v1557_v18 = vadd.f32 %v1548_v15, %v3040_v1  ;;  %v1509_v19 = vpop.f32.mrb[45].mxu0  ;;  %v1550_v20 = vpop.f32.mrb[45].mxu1 }
 0x833   :  { %v1556_v26 = vadd.f32 %v1509_v19, %v3041_v29  ;;  %v1558_v23 = vadd.f32 %v1550_v20, %v3042_v8  ;;  %v1511_v25 = vpop.f32.mrb[46].mxu0  ;;  %v1552_v27 = vpop.f32.mrb[46].mxu1 }
 0x834   :  { %v1796_v44 = vmul.f32 -1.442695, %v1555_v16  ;;  %v1512_v33 = vpop.f32.mrb[47].mxu0  ;;  %v1553_v34 = vpop.f32.mrb[47].mxu1  ;;  %v1798_v35 = vmul.f32 -1.442695, %v1557_v18 }
 0x835   :  { %v1797_v31 = vmul.f32 -1.442695, %v1556_v26 }
 0x836   :  { %2060 = vpow2.f32 %v1796_v44 }
 0x837   :  { %2062 = vpow2.f32 %v1797_v31 }
 0x838   :  { %2064 = vtanh.f32 %v1558_v23 }
 0x839   :  { %2066 = vpow2.f32 %v1798_v35 }
 0x840   :  { %v2061_v53 = vpop.eup %2060 }
 0x841   :  { %v1568_v28 = vadd.f32 1.0, %v2061_v53  ;;  %v2063_v24 = vpop.eup %2062 }
 0x842   :  { %v1569_v10 = vadd.f32 1.0, %v2063_v24  ;;  %v2065_v21 = vpop.eup %2064 }
 0x843   :  { %2068 = vrcp.f32 %v1568_v28  ;;  %v2067_v32 = vpop.eup %2066 }
 0x844   :  { %2070 = vrcp.f32 %v1569_v10  ;;  %v1570_v6 = vadd.f32 1.0, %v2067_v32 }
 0x846   :  { %2072 = vrcp.f32 %v1570_v6 }
 0x84d   :  { %v2069_v12 = vpop.eup %2068 }
 0x84e   :  { %v1579_v7 = vmul.f32 %v2069_v12, %v2065_v21  ;;  %v2071_v11 = vpop.eup %2070 }
 0x84f   :  { %v1578_v22 = vmul.f32 %v2071_v11, %v2953_v4 }
 0x850   :  { %v2073_v30 = vpop.eup %2072 }
 0x851   :  { %v1580_v9 = vadd.f32 %v1579_v7, %v1578_v22 }
 0x853   :  { %2074 = vtanh.f32 %v1580_v9 }
 0x85d   :  { %v2075_v14 = vpop.eup %2074 }
 0x85e   :  { %v1582_v38 = vmul.f32 %v2075_v14, %v2073_v30 }
 0x860   :  { %v1583_v39 = vpack.c.bf16 %v1582_v38, %v1582_v38 }
 0x862   :  { %1834 = vmatmul.mubr.bf16.vlgmr.msra.gmra.mrb[48].mxu0 %v1583_v39 }
 0x935   :  { %v1689_v41 = vpop.f32.mrb[48].mxu0 }
 0x936   :  { %v1690_v56 = vadd.f32 %v1799_v40, %v1689_v41  ;;  %v1835_v57 = vpop.f32.mrb[49].mxu0 }
 0x937   :  { %v1692_v58 = vpop.f32.mrb[50].mxu0 }
 0x938   :  { %1695 = vst [vmem:[%s2997_s6] sm:$0xff] %v1690_v56  ;;  %v1836_v59 = vpop.f32.mrb[51].mxu0 }

</bundles_post_ra>
